<compile_context>
chip_gen: v6e
topology: v6e:2x2x1
jax: 0.10.0
libtpu: 0.0.40
codegen_flags: <defaults>
</compile_context>

<pallas_src>
import jax
import jax.numpy as jnp
from jax.experimental import pallas as pl
from jax.experimental.pallas import tpu as pltpu


# ---------------------------------------------------------------------------
# helpers
# ---------------------------------------------------------------------------

def _round_up(n, m):
    return (n + m - 1) // m * m


def _pad_axis(a, axis, new_size):
    pad = [(0, 0)] * a.ndim
    pad[axis] = (0, new_size - a.shape[axis])
    return jnp.pad(a, pad)


def _pad_gate_cols(w, H, H_pad):
    """Pad the fused [i,f,g,o] gate axis (last dim, size 4*H) to 4*H_pad,
    padding each gate chunk independently with zeros."""
    lead = w.shape[:-1]
    w4 = w.reshape(*lead, 4, H)
    w4 = jnp.pad(w4, [(0, 0)] * len(lead) + [(0, 0), (0, H_pad - H)])
    return w4.reshape(*lead, 4 * H_pad)


# ---------------------------------------------------------------------------
# kernel
# ---------------------------------------------------------------------------

def make_decoder_kernel(num_layers, t_block, B_pad, H_pad, O_pad, in0,
                        use_bf16):
    n_in = 3 + 3 * num_layers + 2
    compute_dtype = jnp.bfloat16 if use_bf16 else jnp.float32
    rows = t_block * B_pad

    def kernel(*refs):
        # inputs:  x_blk, h0(ANY), c0(ANY), [w_ih, w_hh, b]*L, w_fc, b_fc
        # outputs: out_blk
        # scratch: h_scr, c_scr, seq_scr, proj_scr, init_sem
        x_ref, h0_ref, c0_ref = refs[:3]
        layer_refs = refs[3:3 + 3 * num_layers]
        w_fc_ref = refs[3 + 3 * num_layers]
        b_fc_ref = refs[4 + 3 * num_layers]
        out_ref = refs[n_in]
        h_scr, c_scr, seq_scr, proj_scr, init_sem = refs[n_in + 1:]

        # Initialize the carried h/c state from HBM only on the first block.
        @pl.when(pl.program_id(0) == 0)
        def _init():
            cp_h = pltpu.make_async_copy(h0_ref, h_scr, init_sem.at[0])
            cp_c = pltpu.make_async_copy(c0_ref, c_scr, init_sem.at[1])
            cp_h.start()
            cp_c.start()
            cp_h.wait()
            cp_c.wait()

        # Layer-major processing of this time block.
        for l in range(num_layers):
            w_ih = layer_refs[3 * l][...].astype(compute_dtype)   # (in_l, 4H)
            w_hh = layer_refs[3 * l + 1][...].astype(compute_dtype)  # (H, 4H)
            b = layer_refs[3 * l + 2][...]                        # (1, 4H) f32

            # Batched input projection over ALL timesteps (one big MXU op).
            if l == 0:
                layer_in = x_ref[...].reshape(rows, in0).astype(compute_dtype)
            else:
                layer_in = seq_scr[...].astype(compute_dtype)     # (rows, H)
            proj_scr[...] = (jnp.dot(layer_in, w_ih,
                                     preferred_element_type=jnp.float32)
                             + b)                                 # (rows, 4H)

            # Sequential recurrence: only h_{t-1} @ W_hh left per timestep.
            @pl.loop(0, t_block)
            def _timestep(t, l=l, w_hh=w_hh):
                row = pl.multiple_of(t * B_pad, B_pad)
                h_prev = h_scr[l]                                 # (B_pad, H) f32
                c_prev = c_scr[l]                                 # (B_pad, H) f32

                gates = (proj_scr[pl.ds(row, B_pad), :]
                         + jnp.dot(h_prev.astype(compute_dtype), w_hh,
                                   preferred_element_type=jnp.float32))

                # H_pad is a multiple of 128 -> lane-aligned gate slices.
                i_g = jax.nn.sigmoid(gates[:, 0:H_pad])
                f_g = jax.nn.sigmoid(gates[:, H_pad:2 * H_pad])
                g_g = jnp.tanh(gates[:, 2 * H_pad:3 * H_pad])
                o_g = jax.nn.sigmoid(gates[:, 3 * H_pad:4 * H_pad])

                c_new = f_g * c_prev + i_g * g_g
                h_new = o_g * jnp.tanh(c_new)

                h_scr[l] = h_new
                c_scr[l] = c_new
                seq_scr[pl.ds(row, B_pad), :] = h_new             # feeds layer l+1

        # One batched FC projection per time block + one lane-dense store.
        proj = (jnp.dot(seq_scr[...].astype(compute_dtype), w_fc_ref[...],
                        preferred_element_type=jnp.float32)
                + b_fc_ref[...])                                  # (rows, O_pad)
        out_ref[...] = proj.reshape(t_block, B_pad, O_pad)

    return kernel


# ---------------------------------------------------------------------------
# wrapper
# ---------------------------------------------------------------------------

def decoder_forward(x, hidden, params, *, t_block=None, use_bf16=False):
    """x: (B, T, latent) f32; hidden: (h0, c0) each (num_layers, B, H)."""
    h0, c0 = hidden
    num_layers, B, H = h0.shape
    _, T, L = x.shape
    w_fc, b_fc = params["fc"]
    O = w_fc.shape[1]

    B_pad = _round_up(B, 8)        # sublane-align batch
    H_pad = _round_up(H, 128)      # lane-align each gate / hidden state
    O_pad = _round_up(O, 128)      # lane-dense output stores

    if t_block is None:
        t_block = T if T <= 64 else 64
    t_block = min(t_block, T)
    T_pad = _round_up(T, t_block)
    n_blocks = T_pad // t_block

    weight_dtype = jnp.bfloat16 if use_bf16 else jnp.float32

    # time-major input, padded over T and B
    x_tm = jnp.transpose(x, (1, 0, 2))                           # (T, B, L)
    x_tm = jnp.pad(x_tm, ((0, T_pad - T), (0, B_pad - B), (0, 0)))

    h0_p = jnp.pad(h0, ((0, 0), (0, B_pad - B), (0, H_pad - H)))
    c0_p = jnp.pad(c0, ((0, 0), (0, B_pad - B), (0, H_pad - H)))

    layer_args, layer_specs = [], []
    for l in range(num_layers):
        w_ih, w_hh, b = params["lstm"][l]
        in_pad = L if l == 0 else H_pad
        w_ih_p = _pad_axis(_pad_gate_cols(w_ih, H, H_pad), 0, in_pad)
        w_hh_p = _pad_axis(_pad_gate_cols(w_hh, H, H_pad), 0, H_pad)
        b_p = _pad_gate_cols(b, H, H_pad)
        layer_args += [w_ih_p.astype(weight_dtype),
                       w_hh_p.astype(weight_dtype),
                       b_p]                                       # bias stays f32
        layer_specs += [pl.BlockSpec(w_ih_p.shape, lambda t: (0, 0)),
                        pl.BlockSpec(w_hh_p.shape, lambda t: (0, 0)),
                        pl.BlockSpec(b_p.shape, lambda t: (0, 0))]

    w_fc_p = _pad_axis(_pad_axis(w_fc, 1, O_pad), 0, H_pad).astype(weight_dtype)
    b_fc_p = _pad_axis(b_fc, 1, O_pad)

    in_specs = [
        pl.BlockSpec((t_block, B_pad, L), lambda t: (t, 0, 0)),   # x block
        pl.BlockSpec(memory_space=pl.ANY),                        # h0 (HBM)
        pl.BlockSpec(memory_space=pl.ANY),                        # c0 (HBM)
        *layer_specs,
        pl.BlockSpec(w_fc_p.shape, lambda t: (0, 0)),
        pl.BlockSpec(b_fc_p.shape, lambda t: (0, 0)),
    ]

    kernel = make_decoder_kernel(num_layers, t_block, B_pad, H_pad, O_pad, L,
                                 use_bf16)
    out_tm = pl.pallas_call(
        kernel,
        out_shape=jax.ShapeDtypeStruct((T_pad, B_pad, O_pad), jnp.float32),
        grid_spec=pltpu.PrefetchScalarGridSpec(
            num_scalar_prefetch=0,
            grid=(n_blocks,),
            in_specs=in_specs,
            out_specs=pl.BlockSpec((t_block, B_pad, O_pad),
                                   lambda t: (t, 0, 0)),
            scratch_shapes=[
                pltpu.VMEM((num_layers, B_pad, H_pad), jnp.float32),   # h state
                pltpu.VMEM((num_layers, B_pad, H_pad), jnp.float32),   # c state
                pltpu.VMEM((t_block * B_pad, H_pad), jnp.float32),     # layer out
                pltpu.VMEM((t_block * B_pad, 4 * H_pad), jnp.float32), # in-proj
                pltpu.SemaphoreType.DMA((2,)),                         # init DMAs
            ],
        ),
        # T axis must stay sequential ('arbitrary') — h/c carry across steps.
        compiler_params=pltpu.CompilerParams(
            dimension_semantics=("arbitrary",)),
    )(x_tm, h0_p, c0_p, *layer_args, w_fc_p, b_fc_p)

    out = out_tm[:T, :B, :O]                        # strip T/B/O padding
    return jnp.transpose(out, (1, 0, 2))            # back to (B, T, O)


# ---------------------------------------------------------------------------
# synthetic init + pure-JAX reference
# ---------------------------------------------------------------------------

def init_params(key, latent_size, hidden_size, output_size, num_layers):
    """Deterministic synthetic init; shapes match nn.LSTM + nn.Linear,
    weights stored pre-transposed as (in_features, 4*hidden), gates i,f,g,o."""
    scale = 1.0 / jnp.sqrt(jnp.float32(hidden_size))
    params = {"lstm": [], "fc": None}
    for l in range(num_layers):
        in_l = latent_size if l == 0 else hidden_size
        key, k1, k2, k3 = jax.random.split(key, 4)
        w_ih = jax.random.uniform(k1, (in_l, 4 * hidden_size),
                                  jnp.float32, -scale, scale)
        w_hh = jax.random.uniform(k2, (hidden_size, 4 * hidden_size),
                                  jnp.float32, -scale, scale)
        b = jax.random.uniform(k3, (1, 4 * hidden_size),
                               jnp.float32, -scale, scale)   # b_ih + b_hh fused
        params["lstm"].append((w_ih, w_hh, b))
    key, k1, k2 = jax.random.split(key, 3)
    w_fc = jax.random.uniform(k1, (hidden_size, output_size),
                              jnp.float32, -scale, scale)
    b_fc = jax.random.uniform(k2, (1, output_size), jnp.float32, -scale, scale)
    params["fc"] = (w_fc, b_fc)
    return params


def decoder_reference(x, hidden, params, hidden_size, num_layers):
    H = hidden_size
    h0, c0 = hidden
    B, T, _ = x.shape
    h = [h0[l] for l in range(num_layers)]
    c = [c0[l] for l in range(num_layers)]
    w_fc, b_fc = params["fc"]
    outs = []
    for t in range(T):
        inp = x[:, t, :]
        for l in range(num_layers):
            w_ih, w_hh, b = params["lstm"][l]
            gates = inp @ w_ih + h[l] @ w_hh + b
            i_g = jax.nn.sigmoid(gates[:, 0:H])
            f_g = jax.nn.sigmoid(gates[:, H:2 * H])
            g_g = jnp.tanh(gates[:, 2 * H:3 * H])
            o_g = jax.nn.sigmoid(gates[:, 3 * H:4 * H])
            c[l] = f_g * c[l] + i_g * g_g
            h[l] = o_g * jnp.tanh(c[l])
            inp = h[l]
        outs.append(inp @ w_fc + b_fc)
    return jnp.stack(outs, axis=1)


# ---------------------------------------------------------------------------
# demo / correctness check
# ---------------------------------------------------------------------------

if __name__ == "__main__":
    B, T = 2, 8
    latent_size, hidden_size, output_size, num_layers = 8, 16, 8, 2

    key = jax.random.PRNGKey(0)
    key, kx, kh, kc = jax.random.split(key, 4)
    x = jax.random.normal(kx, (B, T, latent_size), jnp.float32)
    h0 = jax.random.normal(kh, (num_layers, B, hidden_size), jnp.float32)
    c0 = jax.random.normal(kc, (num_layers, B, hidden_size), jnp.float32)
    params = init_params(key, latent_size, hidden_size, output_size, num_layers)

    # 1) whole sequence in one grid step (grid=(1,)), f32 — strict check.
    pred = jax.block_until_ready(decoder_forward(x, (h0, c0), params))
    ref = decoder_reference(x, (h0, c0), params, hidden_size, num_layers)
    assert pred.shape == (B, T, output_size)
    assert jnp.allclose(pred, ref, atol=1e-4, rtol=1e-4), "mismatch (grid=1)"

    # 2) longer sequence, blocked over time (grid=(4,)) — exercises the h/c
    #    state carry across grid steps and the layer-major block pipeline.
    T2 = 32
    key, kx2 = jax.random.split(key)
    x2 = jax.random.normal(kx2, (B, T2, latent_size), jnp.float32)
    pred2 = jax.block_until_ready(
        decoder_forward(x2, (h0, c0), params, t_block=8))
    ref2 = decoder_reference(x2, (h0, c0), params, hidden_size, num_layers)
    assert pred2.shape == (B, T2, output_size)
    assert jnp.allclose(pred2, ref2, atol=1e-4, rtol=1e-4), "mismatch (blocked)"

    # 3) bf16-MXU variant (v6e/v7x recommendation): smoke test only —
    #    elementwise/cell math stays f32, matmul inputs are bf16.
    pred_bf16 = jax.block_until_ready(
        decoder_forward(x, (h0, c0), params, use_bf16=True))
    assert pred_bf16.shape == (B, T, output_size)
    assert bool(jnp.all(jnp.isfinite(pred_bf16)))

    print("KERNEL_OK")
</pallas_src>

<mosaic_0001>
module attributes {stable_mosaic.version = 11 : i64} {
  func.func @kernel(%arg0: i32, %arg1: memref<8x8x8xf32, #tpu.memory_space<vmem>>, %arg2: memref<2x8x128xf32, #tpu.memory_space<any>>, %arg3: memref<2x8x128xf32, #tpu.memory_space<any>>, %arg4: memref<8x512xf32, #tpu.memory_space<vmem>>, %arg5: memref<128x512xf32, #tpu.memory_space<vmem>>, %arg6: memref<1x512xf32, #tpu.memory_space<vmem>>, %arg7: memref<128x512xf32, #tpu.memory_space<vmem>>, %arg8: memref<128x512xf32, #tpu.memory_space<vmem>>, %arg9: memref<1x512xf32, #tpu.memory_space<vmem>>, %arg10: memref<128x128xf32, #tpu.memory_space<vmem>>, %arg11: memref<1x128xf32, #tpu.memory_space<vmem>>, %arg12: memref<8x8x128xf32, #tpu.memory_space<vmem>>, %arg13: memref<2x8x128xf32, #tpu.memory_space<vmem>>, %arg14: memref<2x8x128xf32, #tpu.memory_space<vmem>>, %arg15: memref<64x128xf32, #tpu.memory_space<vmem>>, %arg16: memref<64x512xf32, #tpu.memory_space<vmem>>, %arg17: memref<2x!tpu.dma_semaphore, #tpu.memory_space<semaphore_mem>>) attributes {dimension_semantics = [#tpu.dimension_semantics<arbitrary>], iteration_bounds = array<i64: 1>, scalar_prefetch = 0 : i64, scratch_operands = 5 : i64, tpu.core_type = #tpu.core_type<tc>, window_params = [{transform_indices = @transform_0, window_bounds = array<i64: 8, 8, 8>}, {}, {}, {pipeline_mode = #tpu.pipeline_mode<synchronous>, transform_indices = @transform_3, window_bounds = array<i64: 8, 512>}, {pipeline_mode = #tpu.pipeline_mode<synchronous>, transform_indices = @transform_4, window_bounds = array<i64: 128, 512>}, {pipeline_mode = #tpu.pipeline_mode<synchronous>, transform_indices = @transform_5, window_bounds = array<i64: 1, 512>}, {pipeline_mode = #tpu.pipeline_mode<synchronous>, transform_indices = @transform_6, window_bounds = array<i64: 128, 512>}, {pipeline_mode = #tpu.pipeline_mode<synchronous>, transform_indices = @transform_7, window_bounds = array<i64: 128, 512>}, {pipeline_mode = #tpu.pipeline_mode<synchronous>, transform_indices = @transform_8, window_bounds = array<i64: 1, 512>}, {pipeline_mode = #tpu.pipeline_mode<synchronous>, transform_indices = @transform_9, window_bounds = array<i64: 128, 128>}, {pipeline_mode = #tpu.pipeline_mode<synchronous>, transform_indices = @transform_10, window_bounds = array<i64: 1, 128>}, {transform_indices = @transform_11, window_bounds = array<i64: 8, 8, 128>}]} {
    %c0_i32 = arith.constant 0 : i32
    %0 = arith.cmpi eq, %arg0, %c0_i32 : i32
    %1 = arith.extui %0 : i1 to i32
    %c0_i32_0 = arith.constant 0 : i32
    %2 = arith.cmpi ne, %1, %c0_i32_0 : i32
    scf.if %2 {
      %c0_i32_38 = arith.constant 0 : i32
      %30 = tpu.memref_slice %arg17[%c0_i32_38] : memref<2x!tpu.dma_semaphore, #tpu.memory_space<semaphore_mem>> -> memref<1x!tpu.dma_semaphore, #tpu.memory_space<semaphore_mem>>
      %31 = tpu.memref_squeeze %30 : memref<1x!tpu.dma_semaphore, #tpu.memory_space<semaphore_mem>> -> memref<!tpu.dma_semaphore, #tpu.memory_space<semaphore_mem>>
      tpu.enqueue_dma source(%arg2 : memref<2x8x128xf32, #tpu.memory_space<any>>) target(%arg13 : memref<2x8x128xf32, #tpu.memory_space<vmem>>) target_semaphore(%31 : memref<!tpu.dma_semaphore, #tpu.memory_space<semaphore_mem>>)
      %c1_i32_39 = arith.constant 1 : i32
      %32 = tpu.memref_slice %arg17[%c1_i32_39] : memref<2x!tpu.dma_semaphore, #tpu.memory_space<semaphore_mem>> -> memref<1x!tpu.dma_semaphore, #tpu.memory_space<semaphore_mem>>
      %33 = tpu.memref_squeeze %32 : memref<1x!tpu.dma_semaphore, #tpu.memory_space<semaphore_mem>> -> memref<!tpu.dma_semaphore, #tpu.memory_space<semaphore_mem>>
      tpu.enqueue_dma source(%arg3 : memref<2x8x128xf32, #tpu.memory_space<any>>) target(%arg14 : memref<2x8x128xf32, #tpu.memory_space<vmem>>) target_semaphore(%33 : memref<!tpu.dma_semaphore, #tpu.memory_space<semaphore_mem>>)
      %c0_i32_40 = arith.constant 0 : i32
      %34 = tpu.memref_slice %arg17[%c0_i32_40] : memref<2x!tpu.dma_semaphore, #tpu.memory_space<semaphore_mem>> -> memref<1x!tpu.dma_semaphore, #tpu.memory_space<semaphore_mem>>
      %35 = tpu.memref_squeeze %34 : memref<1x!tpu.dma_semaphore, #tpu.memory_space<semaphore_mem>> -> memref<!tpu.dma_semaphore, #tpu.memory_space<semaphore_mem>>
      tpu.wait_dma2 semaphore(%35 : memref<!tpu.dma_semaphore, #tpu.memory_space<semaphore_mem>>) src(%arg2 : memref<2x8x128xf32, #tpu.memory_space<any>>) dst(%arg13 : memref<2x8x128xf32, #tpu.memory_space<vmem>>)
      %c1_i32_41 = arith.constant 1 : i32
      %36 = tpu.memref_slice %arg17[%c1_i32_41] : memref<2x!tpu.dma_semaphore, #tpu.memory_space<semaphore_mem>> -> memref<1x!tpu.dma_semaphore, #tpu.memory_space<semaphore_mem>>
      %37 = tpu.memref_squeeze %36 : memref<1x!tpu.dma_semaphore, #tpu.memory_space<semaphore_mem>> -> memref<!tpu.dma_semaphore, #tpu.memory_space<semaphore_mem>>
      tpu.wait_dma2 semaphore(%37 : memref<!tpu.dma_semaphore, #tpu.memory_space<semaphore_mem>>) src(%arg3 : memref<2x8x128xf32, #tpu.memory_space<any>>) dst(%arg14 : memref<2x8x128xf32, #tpu.memory_space<vmem>>)
    } else {
    }
    %c0 = arith.constant 0 : index
    %c0_1 = arith.constant 0 : index
    %3 = vector.load %arg4[%c0, %c0_1] : memref<8x512xf32, #tpu.memory_space<vmem>>, vector<8x512xf32>
    %c0_2 = arith.constant 0 : index
    %c0_3 = arith.constant 0 : index
    %4 = vector.load %arg5[%c0_2, %c0_3] : memref<128x512xf32, #tpu.memory_space<vmem>>, vector<128x512xf32>
    %c0_4 = arith.constant 0 : index
    %c0_5 = arith.constant 0 : index
    %5 = vector.load %arg6[%c0_4, %c0_5] : memref<1x512xf32, #tpu.memory_space<vmem>>, vector<1x512xf32>
    %c0_6 = arith.constant 0 : index
    %c0_7 = arith.constant 0 : index
    %c0_8 = arith.constant 0 : index
    %6 = vector.load %arg1[%c0_6, %c0_7, %c0_8] : memref<8x8x8xf32, #tpu.memory_space<vmem>>, vector<8x8x8xf32>
    %7 = vector.shape_cast %6 : vector<8x8x8xf32> to vector<64x8xf32>
    %cst = arith.constant dense<0.000000e+00> : vector<64x512xf32>
    %8 = tpu.matmul %7, %3, %cst {dimension_numbers = #tpu.dot_dimension_numbers<[1], [0], [0], [1], [0, 0, 1, 1], [], []>} : vector<64x8xf32>, vector<8x512xf32>, vector<64x512xf32> -> vector<64x512xf32>
    %9 = vector.broadcast %5 : vector<1x512xf32> to vector<64x512xf32>
    %10 = arith.addf %8, %9 : vector<64x512xf32>
    %c0_9 = arith.constant 0 : index
    %c0_10 = arith.constant 0 : index
    %11 = vector.load %arg16[%c0_9, %c0_10] : memref<64x512xf32, #tpu.memory_space<vmem>>, vector<64x512xf32>
    tpu.vector_store %arg16[%c0_9, %c0_10], %10 {strides = array<i32>} : memref<64x512xf32, #tpu.memory_space<vmem>>, vector<64x512xf32>,
    %c0_i32_11 = arith.constant 0 : i32
    %c8_i32 = arith.constant 8 : i32
    %12 = arith.addi %c0_i32_11, %c8_i32 : i32
    %c1_i32 = arith.constant 1 : i32
    scf.for %arg18 = %c0_i32_11 to %12 step %c1_i32  : i32 {
      %c1_i32_38 = arith.constant 1 : i32
      %30 = arith.muli %arg18, %c1_i32_38 : i32
      %c0_i32_39 = arith.constant 0 : i32
      %31 = arith.addi %c0_i32_39, %30 : i32
      %c8_i32_40 = arith.constant 8 : i32
      %32 = arith.muli %31, %c8_i32_40 : i32
      %33 = tpu.assume_multiple %32, 8 : i32
      %c0_41 = arith.constant 0 : index
      %c0_42 = arith.constant 0 : index
      %c0_43 = arith.constant 0 : index
      %34 = vector.load %arg13[%c0_41, %c0_42, %c0_43] : memref<2x8x128xf32, #tpu.memory_space<vmem>>, vector<1x8x128xf32>
      %35 = vector.shape_cast %34 : vector<1x8x128xf32> to vector<8x128xf32>
      %c0_44 = arith.constant 0 : index
      %c0_45 = arith.constant 0 : index
      %c0_46 = arith.constant 0 : index
      %36 = vector.load %arg14[%c0_44, %c0_45, %c0_46] : memref<2x8x128xf32, #tpu.memory_space<vmem>>, vector<1x8x128xf32>
      %37 = vector.shape_cast %36 : vector<1x8x128xf32> to vector<8x128xf32>
      %38 = arith.index_cast %33 : i32 to index
      %c0_47 = arith.constant 0 : index
      %39 = vector.load %arg16[%38, %c0_47] : memref<64x512xf32, #tpu.memory_space<vmem>>, vector<8x512xf32>
      %cst_48 = arith.constant dense<0.000000e+00> : vector<8x512xf32>
      %40 = tpu.matmul %35, %4, %cst_48 {dimension_numbers = #tpu.dot_dimension_numbers<[1], [0], [0], [1], [0, 0, 1, 1], [], []>} : vector<8x128xf32>, vector<128x512xf32>, vector<8x512xf32> -> vector<8x512xf32>
      %41 = arith.addf %39, %40 : vector<8x512xf32>
      %42 = vector.extract_strided_slice %41 {offsets = [0, 0], sizes = [8, 128], strides = [1, 1]} : vector<8x512xf32> to vector<8x128xf32>
      %43 = arith.negf %42 : vector<8x128xf32>
      %44 = math.exp %43 : vector<8x128xf32>
      %cst_49 = arith.constant 1.000000e+00 : f32
      %45 = vector.broadcast %cst_49 : f32 to vector<8x128xf32>
      %46 = arith.addf %45, %44 : vector<8x128xf32>
      %47 = arith.divf %45, %46 : vector<8x128xf32>
      %48 = vector.extract_strided_slice %41 {offsets = [0, 128], sizes = [8, 128], strides = [1, 1]} : vector<8x512xf32> to vector<8x128xf32>
      %49 = arith.negf %48 : vector<8x128xf32>
      %50 = math.exp %49 : vector<8x128xf32>
      %cst_50 = arith.constant 1.000000e+00 : f32
      %51 = vector.broadcast %cst_50 : f32 to vector<8x128xf32>
      %52 = arith.addf %51, %50 : vector<8x128xf32>
      %53 = arith.divf %51, %52 : vector<8x128xf32>
      %54 = vector.extract_strided_slice %41 {offsets = [0, 256], sizes = [8, 128], strides = [1, 1]} : vector<8x512xf32> to vector<8x128xf32>
      %55 = math.tanh %54 : vector<8x128xf32>
      %56 = vector.extract_strided_slice %41 {offsets = [0, 384], sizes = [8, 128], strides = [1, 1]} : vector<8x512xf32> to vector<8x128xf32>
      %57 = arith.negf %56 : vector<8x128xf32>
      %58 = math.exp %57 : vector<8x128xf32>
      %cst_51 = arith.constant 1.000000e+00 : f32
      %59 = vector.broadcast %cst_51 : f32 to vector<8x128xf32>
      %60 = arith.addf %59, %58 : vector<8x128xf32>
      %61 = arith.divf %59, %60 : vector<8x128xf32>
      %62 = arith.mulf %53, %37 : vector<8x128xf32>
      %63 = arith.mulf %47, %55 : vector<8x128xf32>
      %64 = arith.addf %62, %63 : vector<8x128xf32>
      %65 = math.tanh %64 : vector<8x128xf32>
      %66 = arith.mulf %61, %65 : vector<8x128xf32>
      %c0_52 = arith.constant 0 : index
      %c0_53 = arith.constant 0 : index
      %c0_54 = arith.constant 0 : index
      %67 = vector.load %arg13[%c0_52, %c0_53, %c0_54] : memref<2x8x128xf32, #tpu.memory_space<vmem>>, vector<1x8x128xf32>
      %68 = vector.shape_cast %67 : vector<1x8x128xf32> to vector<8x128xf32>
      %69 = vector.shape_cast %66 : vector<8x128xf32> to vector<1x8x128xf32>
      tpu.vector_store %arg13[%c0_52, %c0_53, %c0_54], %69 {strides = array<i32>} : memref<2x8x128xf32, #tpu.memory_space<vmem>>, vector<1x8x128xf32>,
      %c0_55 = arith.constant 0 : index
      %c0_56 = arith.constant 0 : index
      %c0_57 = arith.constant 0 : index
      %70 = vector.load %arg14[%c0_55, %c0_56, %c0_57] : memref<2x8x128xf32, #tpu.memory_space<vmem>>, vector<1x8x128xf32>
      %71 = vector.shape_cast %70 : vector<1x8x128xf32> to vector<8x128xf32>
      %72 = vector.shape_cast %64 : vector<8x128xf32> to vector<1x8x128xf32>
      tpu.vector_store %arg14[%c0_55, %c0_56, %c0_57], %72 {strides = array<i32>} : memref<2x8x128xf32, #tpu.memory_space<vmem>>, vector<1x8x128xf32>,
      %73 = arith.index_cast %33 : i32 to index
      %c0_58 = arith.constant 0 : index
      %74 = vector.load %arg15[%73, %c0_58] : memref<64x128xf32, #tpu.memory_space<vmem>>, vector<8x128xf32>
      tpu.vector_store %arg15[%73, %c0_58], %66 {strides = array<i32>} : memref<64x128xf32, #tpu.memory_space<vmem>>, vector<8x128xf32>,
    }
    %c8_i32_12 = arith.constant 8 : i32
    %c0_13 = arith.constant 0 : index
    %c0_14 = arith.constant 0 : index
    %13 = vector.load %arg7[%c0_13, %c0_14] : memref<128x512xf32, #tpu.memory_space<vmem>>, vector<128x512xf32>
    %c0_15 = arith.constant 0 : index
    %c0_16 = arith.constant 0 : index
    %14 = vector.load %arg8[%c0_15, %c0_16] : memref<128x512xf32, #tpu.memory_space<vmem>>, vector<128x512xf32>
    %c0_17 = arith.constant 0 : index
    %c0_18 = arith.constant 0 : index
    %15 = vector.load %arg9[%c0_17, %c0_18] : memref<1x512xf32, #tpu.memory_space<vmem>>, vector<1x512xf32>
    %c0_19 = arith.constant 0 : index
    %c0_20 = arith.constant 0 : index
    %16 = vector.load %arg15[%c0_19, %c0_20] : memref<64x128xf32, #tpu.memory_space<vmem>>, vector<64x128xf32>
    %cst_21 = arith.constant dense<0.000000e+00> : vector<64x512xf32>
    %17 = tpu.matmul %16, %13, %cst_21 {dimension_numbers = #tpu.dot_dimension_numbers<[1], [0], [0], [1], [0, 0, 1, 1], [], []>} : vector<64x128xf32>, vector<128x512xf32>, vector<64x512xf32> -> vector<64x512xf32>
    %18 = vector.broadcast %15 : vector<1x512xf32> to vector<64x512xf32>
    %19 = arith.addf %17, %18 : vector<64x512xf32>
    %c0_22 = arith.constant 0 : index
    %c0_23 = arith.constant 0 : index
    %20 = vector.load %arg16[%c0_22, %c0_23] : memref<64x512xf32, #tpu.memory_space<vmem>>, vector<64x512xf32>
    tpu.vector_store %arg16[%c0_22, %c0_23], %19 {strides = array<i32>} : memref<64x512xf32, #tpu.memory_space<vmem>>, vector<64x512xf32>,
    %c0_i32_24 = arith.constant 0 : i32
    %c8_i32_25 = arith.constant 8 : i32
    %21 = arith.addi %c0_i32_24, %c8_i32_25 : i32
    %c1_i32_26 = arith.constant 1 : i32
    scf.for %arg18 = %c0_i32_24 to %21 step %c1_i32_26  : i32 {
      %c1_i32_38 = arith.constant 1 : i32
      %30 = arith.muli %arg18, %c1_i32_38 : i32
      %c0_i32_39 = arith.constant 0 : i32
      %31 = arith.addi %c0_i32_39, %30 : i32
      %c8_i32_40 = arith.constant 8 : i32
      %32 = arith.muli %31, %c8_i32_40 : i32
      %33 = tpu.assume_multiple %32, 8 : i32
      %c1 = arith.constant 1 : index
      %c0_41 = arith.constant 0 : index
      %c0_42 = arith.constant 0 : index
      %34 = vector.load %arg13[%c1, %c0_41, %c0_42] : memref<2x8x128xf32, #tpu.memory_space<vmem>>, vector<1x8x128xf32>
      %35 = vector.shape_cast %34 : vector<1x8x128xf32> to vector<8x128xf32>
      %c1_43 = arith.constant 1 : index
      %c0_44 = arith.constant 0 : index
      %c0_45 = arith.constant 0 : index
      %36 = vector.load %arg14[%c1_43, %c0_44, %c0_45] : memref<2x8x128xf32, #tpu.memory_space<vmem>>, vector<1x8x128xf32>
      %37 = vector.shape_cast %36 : vector<1x8x128xf32> to vector<8x128xf32>
      %38 = arith.index_cast %33 : i32 to index
      %c0_46 = arith.constant 0 : index
      %39 = vector.load %arg16[%38, %c0_46] : memref<64x512xf32, #tpu.memory_space<vmem>>, vector<8x512xf32>
      %cst_47 = arith.constant dense<0.000000e+00> : vector<8x512xf32>
      %40 = tpu.matmul %35, %14, %cst_47 {dimension_numbers = #tpu.dot_dimension_numbers<[1], [0], [0], [1], [0, 0, 1, 1], [], []>} : vector<8x128xf32>, vector<128x512xf32>, vector<8x512xf32> -> vector<8x512xf32>
      %41 = arith.addf %39, %40 : vector<8x512xf32>
      %42 = vector.extract_strided_slice %41 {offsets = [0, 0], sizes = [8, 128], strides = [1, 1]} : vector<8x512xf32> to vector<8x128xf32>
      %43 = arith.negf %42 : vector<8x128xf32>
      %44 = math.exp %43 : vector<8x128xf32>
      %cst_48 = arith.constant 1.000000e+00 : f32
      %45 = vector.broadcast %cst_48 : f32 to vector<8x128xf32>
      %46 = arith.addf %45, %44 : vector<8x128xf32>
      %47 = arith.divf %45, %46 : vector<8x128xf32>
      %48 = vector.extract_strided_slice %41 {offsets = [0, 128], sizes = [8, 128], strides = [1, 1]} : vector<8x512xf32> to vector<8x128xf32>
      %49 = arith.negf %48 : vector<8x128xf32>
      %50 = math.exp %49 : vector<8x128xf32>
      %cst_49 = arith.constant 1.000000e+00 : f32
      %51 = vector.broadcast %cst_49 : f32 to vector<8x128xf32>
      %52 = arith.addf %51, %50 : vector<8x128xf32>
      %53 = arith.divf %51, %52 : vector<8x128xf32>
      %54 = vector.extract_strided_slice %41 {offsets = [0, 256], sizes = [8, 128], strides = [1, 1]} : vector<8x512xf32> to vector<8x128xf32>
      %55 = math.tanh %54 : vector<8x128xf32>
      %56 = vector.extract_strided_slice %41 {offsets = [0, 384], sizes = [8, 128], strides = [1, 1]} : vector<8x512xf32> to vector<8x128xf32>
      %57 = arith.negf %56 : vector<8x128xf32>
      %58 = math.exp %57 : vector<8x128xf32>
      %cst_50 = arith.constant 1.000000e+00 : f32
      %59 = vector.broadcast %cst_50 : f32 to vector<8x128xf32>
      %60 = arith.addf %59, %58 : vector<8x128xf32>
      %61 = arith.divf %59, %60 : vector<8x128xf32>
      %62 = arith.mulf %53, %37 : vector<8x128xf32>
      %63 = arith.mulf %47, %55 : vector<8x128xf32>
      %64 = arith.addf %62, %63 : vector<8x128xf32>
      %65 = math.tanh %64 : vector<8x128xf32>
      %66 = arith.mulf %61, %65 : vector<8x128xf32>
      %c1_51 = arith.constant 1 : index
      %c0_52 = arith.constant 0 : index
      %c0_53 = arith.constant 0 : index
      %67 = vector.load %arg13[%c1_51, %c0_52, %c0_53] : memref<2x8x128xf32, #tpu.memory_space<vmem>>, vector<1x8x128xf32>
      %68 = vector.shape_cast %67 : vector<1x8x128xf32> to vector<8x128xf32>
      %69 = vector.shape_cast %66 : vector<8x128xf32> to vector<1x8x128xf32>
      tpu.vector_store %arg13[%c1_51, %c0_52, %c0_53], %69 {strides = array<i32>} : memref<2x8x128xf32, #tpu.memory_space<vmem>>, vector<1x8x128xf32>,
      %c1_54 = arith.constant 1 : index
      %c0_55 = arith.constant 0 : index
      %c0_56 = arith.constant 0 : index
      %70 = vector.load %arg14[%c1_54, %c0_55, %c0_56] : memref<2x8x128xf32, #tpu.memory_space<vmem>>, vector<1x8x128xf32>
      %71 = vector.shape_cast %70 : vector<1x8x128xf32> to vector<8x128xf32>
      %72 = vector.shape_cast %64 : vector<8x128xf32> to vector<1x8x128xf32>
      tpu.vector_store %arg14[%c1_54, %c0_55, %c0_56], %72 {strides = array<i32>} : memref<2x8x128xf32, #tpu.memory_space<vmem>>, vector<1x8x128xf32>,
      %73 = arith.index_cast %33 : i32 to index
      %c0_57 = arith.constant 0 : index
      %74 = vector.load %arg15[%73, %c0_57] : memref<64x128xf32, #tpu.memory_space<vmem>>, vector<8x128xf32>
      tpu.vector_store %arg15[%73, %c0_57], %66 {strides = array<i32>} : memref<64x128xf32, #tpu.memory_space<vmem>>, vector<8x128xf32>,
    }
    %c8_i32_27 = arith.constant 8 : i32
    %c0_28 = arith.constant 0 : index
    %c0_29 = arith.constant 0 : index
    %22 = vector.load %arg15[%c0_28, %c0_29] : memref<64x128xf32, #tpu.memory_space<vmem>>, vector<64x128xf32>
    %c0_30 = arith.constant 0 : index
    %c0_31 = arith.constant 0 : index
    %23 = vector.load %arg10[%c0_30, %c0_31] : memref<128x128xf32, #tpu.memory_space<vmem>>, vector<128x128xf32>
    %cst_32 = arith.constant dense<0.000000e+00> : vector<64x128xf32>
    %24 = tpu.matmul %22, %23, %cst_32 {dimension_numbers = #tpu.dot_dimension_numbers<[1], [0], [0], [1], [0, 0, 1, 1], [], []>} : vector<64x128xf32>, vector<128x128xf32>, vector<64x128xf32> -> vector<64x128xf32>
    %c0_33 = arith.constant 0 : index
    %c0_34 = arith.constant 0 : index
    %25 = vector.load %arg11[%c0_33, %c0_34] : memref<1x128xf32, #tpu.memory_space<vmem>>, vector<1x128xf32>
    %26 = vector.broadcast %25 : vector<1x128xf32> to vector<64x128xf32>
    %27 = arith.addf %24, %26 : vector<64x128xf32>
    %28 = vector.shape_cast %27 : vector<64x128xf32> to vector<8x8x128xf32>
    %c0_35 = arith.constant 0 : index
    %c0_36 = arith.constant 0 : index
    %c0_37 = arith.constant 0 : index
    %29 = vector.load %arg12[%c0_35, %c0_36, %c0_37] : memref<8x8x128xf32, #tpu.memory_space<vmem>>, vector<8x8x128xf32>
    tpu.vector_store %arg12[%c0_35, %c0_36, %c0_37], %28 {strides = array<i32>} : memref<8x8x128xf32, #tpu.memory_space<vmem>>, vector<8x8x128xf32>,
    return
  }
  func.func @transform_0(%arg0: i32) -> (i32, i32, i32) {
    %c0_i32 = arith.constant 0 : i32
    %c0_i32_0 = arith.constant 0 : i32
    %c0_i32_1 = arith.constant 0 : i32
    return %arg0, %c0_i32, %c0_i32_0 : i32, i32, i32
  }
  func.func @transform_3(%arg0: i32) -> (i32, i32) {
    %c0_i32 = arith.constant 0 : i32
    %c0_i32_0 = arith.constant 0 : i32
    %c0_i32_1 = arith.constant 0 : i32
    return %c0_i32, %c0_i32_0 : i32, i32
  }
  func.func @transform_4(%arg0: i32) -> (i32, i32) {
    %c0_i32 = arith.constant 0 : i32
    %c0_i32_0 = arith.constant 0 : i32
    %c0_i32_1 = arith.constant 0 : i32
    return %c0_i32, %c0_i32_0 : i32, i32
  }
  func.func @transform_5(%arg0: i32) -> (i32, i32) {
    %c0_i32 = arith.constant 0 : i32
    %c0_i32_0 = arith.constant 0 : i32
    %c0_i32_1 = arith.constant 0 : i32
    return %c0_i32, %c0_i32_0 : i32, i32
  }
  func.func @transform_6(%arg0: i32) -> (i32, i32) {
    %c0_i32 = arith.constant 0 : i32
    %c0_i32_0 = arith.constant 0 : i32
    %c0_i32_1 = arith.constant 0 : i32
    return %c0_i32, %c0_i32_0 : i32, i32
  }
  func.func @transform_7(%arg0: i32) -> (i32, i32) {
    %c0_i32 = arith.constant 0 : i32
    %c0_i32_0 = arith.constant 0 : i32
    %c0_i32_1 = arith.constant 0 : i32
    return %c0_i32, %c0_i32_0 : i32, i32
  }
  func.func @transform_8(%arg0: i32) -> (i32, i32) {
    %c0_i32 = arith.constant 0 : i32
    %c0_i32_0 = arith.constant 0 : i32
    %c0_i32_1 = arith.constant 0 : i32
    return %c0_i32, %c0_i32_0 : i32, i32
  }
  func.func @transform_9(%arg0: i32) -> (i32, i32) {
    %c0_i32 = arith.constant 0 : i32
    %c0_i32_0 = arith.constant 0 : i32
    %c0_i32_1 = arith.constant 0 : i32
    return %c0_i32, %c0_i32_0 : i32, i32
  }
  func.func @transform_10(%arg0: i32) -> (i32, i32) {
    %c0_i32 = arith.constant 0 : i32
    %c0_i32_0 = arith.constant 0 : i32
    %c0_i32_1 = arith.constant 0 : i32
    return %c0_i32, %c0_i32_0 : i32, i32
  }
  func.func @transform_11(%arg0: i32) -> (i32, i32, i32) {
    %c0_i32 = arith.constant 0 : i32
    %c0_i32_0 = arith.constant 0 : i32
    %c0_i32_1 = arith.constant 0 : i32
    return %arg0, %c0_i32, %c0_i32_0 : i32, i32, i32
  }
}

</mosaic_0001>

<bundles_post_ra>
// kernel: tpu_custom_call.1
= control target key start
LH: loop header
LB: loop body
LE: loop exit
PB: predicated region body
PF: predicated region fallthrough
CT: control target
= control target key end

     0   :  { %16 = vsyncpa [#allocation8], 0  ;;  %s2623_s0 = inlined_call_operand.hbm [shape: f32[8,8,8], index: 0, kind: input, shape index: {}]   ;;  %s2624_s1 = inlined_call_operand.hbm [shape: f32[2,8,128], index: 1, kind: input, shape index: {}]   ;;  %s2625_s2 = inlined_call_operand.hbm [shape: f32[2,8,128], index: 2, kind: input, shape index: {}]   ;;  %s2626_s3 = inlined_call_operand.hbm [shape: f32[8,512], index: 3, kind: input, shape index: {}]   ;;  %s2627_s4 = inlined_call_operand.hbm [shape: f32[128,512], index: 4, kind: input, shape index: {}]   ;;  %s2628_s5 = inlined_call_operand.vmem [shape: f32[1,512], index: 5, kind: input, shape index: {}]   ;;  %s2629_s6 = inlined_call_operand.hbm [shape: f32[128,512], index: 6, kind: input, shape index: {}]   ;;  %s2630_s7 = inlined_call_operand.hbm [shape: f32[128,512], index: 7, kind: input, shape index: {}]   ;;  %s2631_s8 = inlined_call_operand.vmem [shape: f32[1,512], index: 8, kind: input, shape index: {}]   ;;  %s2632_s9 = inlined_call_operand.hbm [shape: f32[128,128], index: 9, kind: input, shape index: {}]   ;;  %s2633_s10 = inlined_call_operand.vmem [shape: f32[1,128], index: 10, kind: input, shape index: {}]   ;;  %s2634_s11 = inlined_call_operand.hbm [shape: f32[8,8,128], index: 11, kind: output, shape index: {}]  }
   0x1   :  { %17 = vsyncpa [#allocation11], 0 }
   0x2   :  { %18 = vsyncpa [#allocation14], 0 }
   0x3   :  { %19 = vsyncpa [#allocation17], 0 }
   0x4   :  { %20 = vsyncpa [#allocation9], 0  ;;  %s1933_s17 = smov [#allocation10]  }
   0x5   :  { %s39_s18 = sshll.u32 %s1933_s17, 4  ;;  %s40_s18 = int_to_ptr.vmem [resolvable:$true] %s39_s18 }
   0x6   :  { %s1731_s19 = scalar_lea.vmem %s40_s18, 512  ;;  %p1736_p1 = scmp.lt.s32.totalorder %s40_s18, %s40_s18 }
   0x7   :  { %p1732_p0 = scmp.ne.s32.totalorder %s40_s18, %s1731_s19  ;;  %p1737_p2 = scmp.lt.s32.totalorder %s1731_s19, %s1731_s19 }
   0x9   :  { %p1738_p3 = por %p1737_p2, %p1736_p1 }
   0xb   :  { %p1739_p4 = pnand %p1738_p3, %p1732_p0 }
   0xd   :  { %1742 = shalt.err (!%p1739_p4)
}
   0xe   :  { %42 = dma.hbm_to_vmem [thread:$0]  %s2626_s3, 512, %s40_s18, [#allocation11]  }
   0xf   :  { %s1934_s22 = smov [#allocation13]   ;;  %s1935_s24 = smov [#allocation7]  }
  0x10   :  { %s62_s23 = sshll.u32 %s1934_s22, 4  ;;  %s26_s25 = sshll.u32 %s1935_s24, 4  ;;  %s63_s23 = int_to_ptr.vmem [resolvable:$true] %s62_s23  ;;  %s27_s25 = int_to_ptr.vmem [resolvable:$true] %s26_s25 }
  0x11   :  { %s1751_s26 = scalar_lea.vmem %s63_s23, 8192  ;;  %p1756_p6 = scmp.lt.s32.totalorder %s63_s23, %s63_s23 }
  0x12   :  { %p1752_p5 = scmp.ne.s32.totalorder %s63_s23, %s1751_s26  ;;  %p1757_p7 = scmp.lt.s32.totalorder %s1751_s26, %s1751_s26 }
  0x14   :  { %p1758_p8 = por %p1757_p7, %p1756_p6 }
  0x16   :  { %p1759_p9 = pnand %p1758_p8, %p1752_p5 }
  0x18   :  { %1762 = shalt.err (!%p1759_p9)
}
  0x19   :  { %s1936_s27 = smov 512   ;;  %s1937_s28 = smov 32  }
  0x1a   :  { %68 = dma.hbm_to_vmem [thread:$0]  %s2629_s6, 8192, %s63_s23, [#allocation14], %s1936_s27, %s1936_s27, %s1937_s28  }
  0x1b   :  { %s1771_s3 = scalar_lea.vmem %s27_s25, 1024  ;;  %p1776_p11 = scmp.lt.s32.totalorder %s27_s25, %s27_s25 }
  0x1c   :  { %p1772_p10 = scmp.ne.s32.totalorder %s27_s25, %s1771_s3  ;;  %p1777_p12 = scmp.lt.s32.totalorder %s1771_s3, %s1771_s3 }
  0x1e   :  { %p1778_p13 = por %p1777_p12, %p1776_p11 }
  0x20   :  { %p1779_p0 = pnand %p1778_p13, %p1772_p10 }
  0x22   :  { %1782 = shalt.err (!%p1779_p0)
}
  0x23   :  { %s1938_s12 = smov 128   ;;  %s1939_s13 = smov 8  }
  0x24   :  { %32 = dma.hbm_to_vmem [thread:$0]  %s2623_s0, 1024, %s27_s25, [#allocation8], %s1938_s12, %s1938_s12, %s1939_s13  }
  0x25   :  { %s1940_s16 = smov [#allocation12]   ;;  %s1941_s6 = smov [#allocation15]  }
  0x26   :  { %s48_s17 = sshll.u32 %s1940_s16, 4  ;;  %s74_s18 = sshll.u32 %s1941_s6, 4  ;;  %s49_s17 = int_to_ptr.vmem [resolvable:$true] %s48_s17  ;;  %s75_s18 = int_to_ptr.vmem [resolvable:$true] %s74_s18 }
  0x27   :  { %s1791_s19 = scalar_lea.vmem %s49_s17, 8192  ;;  %p1796_p2 = scmp.lt.s32.totalorder %s49_s17, %s49_s17 }
  0x28   :  { %p1792_p1 = scmp.ne.s32.totalorder %s49_s17, %s1791_s19  ;;  %p1797_p3 = scmp.lt.s32.totalorder %s1791_s19, %s1791_s19 }
  0x2a   :  { %p1798_p4 = por %p1797_p3, %p1796_p2 }
  0x2c   :  { %p1799_p5 = pnand %p1798_p4, %p1792_p1 }
  0x2e   :  { %1802 = shalt.err (!%p1799_p5)
}
  0x2f   :  { %54 = dma.hbm_to_vmem [thread:$0]  %s2627_s4, 8192, %s49_s17, [#allocation11], %s1936_s27, %s1936_s27, %s1937_s28  }
  0x30   :  { %s1811_s0 = scalar_lea.vmem %s75_s18, 8192  ;;  %p1816_p7 = scmp.lt.s32.totalorder %s75_s18, %s75_s18 }
  0x31   :  { %p1812_p6 = scmp.ne.s32.totalorder %s75_s18, %s1811_s0  ;;  %p1817_p8 = scmp.lt.s32.totalorder %s1811_s0, %s1811_s0 }
  0x33   :  { %p1818_p9 = por %p1817_p8, %p1816_p7 }
  0x35   :  { %p1819_p10 = pnand %p1818_p9, %p1812_p6 }
  0x37   :  { %1822 = shalt.err (!%p1819_p10)
}
  0x38   :  { %80 = dma.hbm_to_vmem [thread:$0]  %s2630_s7, 8192, %s75_s18, [#allocation14], %s1936_s27, %s1936_s27, %s1937_s28  }
  0x39   :  { %s1942_s24 = smov [#allocation16]  }
  0x3a   :  { %s88_s25 = sshll.u32 %s1942_s24, 4  ;;  %s89_s25 = int_to_ptr.vmem [resolvable:$true] %s88_s25 }
  0x3b   :  { %s1831_s26 = scalar_lea.vmem %s89_s25, 2048  ;;  %p1836_p12 = scmp.lt.s32.totalorder %s89_s25, %s89_s25 }
  0x3c   :  { %p1832_p11 = scmp.ne.s32.totalorder %s89_s25, %s1831_s26  ;;  %p1837_p13 = scmp.lt.s32.totalorder %s1831_s26, %s1831_s26 }
  0x3e   :  { %p1838_p0 = por %p1837_p13, %p1836_p12 }
  0x40   :  { %p1839_p1 = pnand %p1838_p0, %p1832_p11 }
  0x42   :  { %1842 = shalt.err (!%p1839_p1)
}
  0x43   :  { %94 = dma.hbm_to_vmem [thread:$0]  %s2632_s9, 2048, %s89_s25, [#allocation17], %s1938_s12, %s1938_s12, %s1939_s13  }
  0x44   :  { %1911 = dma.done.wait [#allocation8], 1024  }
  0x45   :  { %1912 = vsyncadd [#allocation8], 4294966272 }
  0x46   :  { %1913 = dma.done.wait [#allocation11], 8704  }
  0x47   :  { %1914 = vsyncadd [#allocation11], 4294958592 }
  0x48   :  { %1915 = dma.done.wait [#allocation14], 16384  }
  0x49   :  { %1916 = vsyncadd [#allocation14], 4294950912 }
  0x4a   :  { %1917 = dma.done.wait [#allocation17], 2048  }
  0x4b   :  { %1918 = vsyncadd [#allocation17], 4294965248  ;;  %s1943_s7 = smov [#allocation2]   ;;  %s1944_s28 = smov [#allocation3]  }
  0x4c   :  { %s126_s27 = sshll.u32 %s1943_s7, 4  ;;  %s138_s30 = sshll.u32 %s1944_s28, 4  ;;  %s127_s27 = int_to_ptr.vmem [resolvable:$true] %s126_s27  ;;  %s139_s30 = int_to_ptr.vmem [resolvable:$true] %s138_s30 }
  0x4d   :  { %s1851_s3 = scalar_lea.vmem %s127_s27, 256  ;;  %p1856_p3 = scmp.lt.s32.totalorder %s127_s27, %s127_s27 }
  0x4e   :  { %p1852_p2 = scmp.ne.s32.totalorder %s127_s27, %s1851_s3  ;;  %p1857_p4 = scmp.lt.s32.totalorder %s1851_s3, %s1851_s3 }
  0x50   :  { %p1858_p5 = por %p1857_p4, %p1856_p3 }
  0x52   :  { %p1859_p6 = pnand %p1858_p5, %p1852_p2 }
  0x54   :  { %1862 = shalt.err (!%p1859_p6)  }
  0x55   :  { %129 = dma.hbm_to_vmem [thread:$0]  %s2624_s1, 256, %s127_s27, [#allocation6] }
  0x56   :  { %s1871_s15 = scalar_lea.vmem %s139_s30, 256  ;;  %p1876_p8 = scmp.lt.s32.totalorder %s139_s30, %s139_s30 }
  0x57   :  { %p1872_p7 = scmp.ne.s32.totalorder %s139_s30, %s1871_s15  ;;  %p1877_p9 = scmp.lt.s32.totalorder %s1871_s15, %s1871_s15 }
  0x59   :  { %p1878_p10 = por %p1877_p9, %p1876_p8 }
  0x5b   :  { %p1879_p11 = pnand %p1878_p10, %p1872_p7 }
  0x5d   :  { %1882 = shalt.err (!%p1879_p11)  }
  0x5e   :  { %141 = dma.hbm_to_vmem [thread:$0]  %s2625_s2, 256, %s139_s30, [#allocation6 + $0x1] }
  0x5f   :  { %1919 = dma.done.wait [#allocation6], 256 }
  0x60   :  { %1920 = vsyncadd [#allocation6], 4294967040 }
  0x61   :  { %1921 = dma.done.wait [#allocation6 + $0x1], 256 }
  0x62   :  { %1922 = vsyncadd [#allocation6 + $0x1], 4294967040  ;;  %v2635_v0 = vmov 0.0   ;;  %v2050_v1 = vld [vmem:[#allocation12] sm:$0xff]  ;;  %v2052_v2 = vld [vmem:[#allocation12 + $0x8] sm:$0xff]  ;;  %vm246_vm0 = vcmask 64512  }
  0x63   :  { %335 = vmatprep.mubr.f32.mxu0 %v2635_v0  ;;  %448 = vmatprep.mubr.f32.mxu1 %v2635_v0  ;;  %2644 = vst [vmem:[#allocation32_spill] sm:$0xff] %v2050_v1  ;;  %2645 = vst [vmem:[#allocation33_spill] sm:$0xff] %v2052_v2  ;;  %v2054_v3 = vld [vmem:[#allocation12 + $0x10] sm:$0xff]  ;;  %v2056_v4 = vld [vmem:[#allocation12 + $0x18] sm:$0xff] }
  0x64   :  { %2646 = vst [vmem:[#allocation34_spill] sm:$0xff] %v2054_v3  ;;  %2647 = vst [vmem:[#allocation35_spill] sm:$0xff] %v2056_v4  ;;  %v2058_v5 = vld [vmem:[#allocation12 + $0x20] sm:$0xff]  ;;  %v2060_v6 = vld [vmem:[#allocation12 + $0x28] sm:$0xff] }
  0x65   :  { %2648 = vst [vmem:[#allocation36_spill] sm:$0xff] %v2058_v5  ;;  %2649 = vst [vmem:[#allocation37_spill] sm:$0xff] %v2060_v6  ;;  %v2062_v7 = vld [vmem:[#allocation12 + $0x30] sm:$0xff]  ;;  %v2064_v8 = vld [vmem:[#allocation12 + $0x38] sm:$0xff] }
  0x66   :  { %2650 = vst [vmem:[#allocation38_spill] sm:$0xff] %v2062_v7  ;;  %2651 = vst [vmem:[#allocation39_spill] sm:$0xff] %v2064_v8  ;;  %v2066_v9 = vld [vmem:[#allocation12 + $0x40] sm:$0xff]  ;;  %v2068_v10 = vld [vmem:[#allocation12 + $0x48] sm:$0xff]  ;;  %v2663_v8 = vmov 0.0  }
  0x67   :  { %2652 = vst [vmem:[#allocation40_spill] sm:$0xff] %v2066_v9  ;;  %2653 = vst [vmem:[#allocation41_spill] sm:$0xff] %v2068_v10  ;;  %v2070_v11 = vld [vmem:[#allocation12 + $0x50] sm:$0xff]  ;;  %v2072_v12 = vld [vmem:[#allocation12 + $0x58] sm:$0xff] }
  0x68   :  { %2654 = vst [vmem:[#allocation42_spill] sm:$0xff] %v2070_v11  ;;  %2655 = vst [vmem:[#allocation43_spill] sm:$0xff] %v2072_v12  ;;  %v2074_v13 = vld [vmem:[#allocation12 + $0x60] sm:$0xff]  ;;  %v2076_v14 = vld [vmem:[#allocation12 + $0x68] sm:$0xff] }
  0x69   :  { %2656 = vst [vmem:[#allocation44_spill] sm:$0xff] %v2074_v13  ;;  %2657 = vst [vmem:[#allocation45_spill] sm:$0xff] %v2076_v14  ;;  %v2078_v15 = vld [vmem:[#allocation12 + $0x70] sm:$0xff]  ;;  %v2080_v16 = vld [vmem:[#allocation12 + $0x78] sm:$0xff] }
  0x6a   :  { %2658 = vst [vmem:[#allocation46_spill] sm:$0xff] %v2078_v15  ;;  %2659 = vst [vmem:[#allocation47_spill] sm:$0xff] %v2080_v16  ;;  %v2082_v17 = vld [vmem:[#allocation12 + $0x80] sm:$0xff]  ;;  %v2084_v18 = vld [vmem:[#allocation12 + $0x88] sm:$0xff] }
  0x6b   :  { %2660 = vst [vmem:[#allocation48_spill] sm:$0xff] %v2082_v17  ;;  %v2086_v19 = vld [vmem:[#allocation12 + $0x90] sm:$0xff]  ;;  %v2088_v20 = vld [vmem:[#allocation12 + $0x98] sm:$0xff]  ;;  %v2090_v21 = vld [vmem:[#allocation12 + $0xa0] sm:$0xff] }
  0x6c   :  { %2661 = vst [vmem:[#allocation49_spill] sm:$0xff] %v2086_v19  ;;  %v2092_v22 = vld [vmem:[#allocation12 + $0xa8] sm:$0xff]  ;;  %v2094_v23 = vld [vmem:[#allocation12 + $0xb0] sm:$0xff]  ;;  %v2096_v24 = vld [vmem:[#allocation12 + $0xb8] sm:$0xff] }
  0x6d   :  { %v2098_v25 = vld [vmem:[#allocation12 + $0xc0] sm:$0xff]  ;;  %v2100_v26 = vld [vmem:[#allocation12 + $0xc8] sm:$0xff]  ;;  %v2102_v27 = vld [vmem:[#allocation12 + $0xd0] sm:$0xff] }
  0x6e   :  { %v2104_v28 = vld [vmem:[#allocation12 + $0xd8] sm:$0xff]  ;;  %v2106_v29 = vld [vmem:[#allocation12 + $0xe0] sm:$0xff]  ;;  %v2108_v30 = vld [vmem:[#allocation12 + $0xe8] sm:$0xff] }
  0x6f   :  { %v2110_v31 = vld [vmem:[#allocation12 + $0xf0] sm:$0xff]  ;;  %v2112_v32 = vld [vmem:[#allocation12 + $0xf8] sm:$0xff]  ;;  %v2114_v33 = vld [vmem:[#allocation12 + $0x100] sm:$0xff] }
  0x70   :  { %v2116_v34 = vld [vmem:[#allocation12 + $0x108] sm:$0xff]  ;;  %v2118_v35 = vld [vmem:[#allocation12 + $0x110] sm:$0xff]  ;;  %v2120_v36 = vld [vmem:[#allocation12 + $0x118] sm:$0xff] }
  0x71   :  { %v2122_v37 = vld [vmem:[#allocation12 + $0x120] sm:$0xff]  ;;  %v2124_v38 = vld [vmem:[#allocation12 + $0x128] sm:$0xff]  ;;  %v2126_v39 = vld [vmem:[#allocation12 + $0x130] sm:$0xff] }
  0x72   :  { %v2128_v40 = vld [vmem:[#allocation12 + $0x138] sm:$0xff]  ;;  %v2130_v41 = vld [vmem:[#allocation12 + $0x140] sm:$0xff]  ;;  %v2132_v42 = vld [vmem:[#allocation12 + $0x148] sm:$0xff] }
  0x73   :  { %v2134_v43 = vld [vmem:[#allocation12 + $0x150] sm:$0xff]  ;;  %v2136_v44 = vld [vmem:[#allocation12 + $0x158] sm:$0xff]  ;;  %v2138_v45 = vld [vmem:[#allocation12 + $0x160] sm:$0xff] }
  0x74   :  { %v2140_v46 = vld [vmem:[#allocation12 + $0x168] sm:$0xff]  ;;  %v2142_v47 = vld [vmem:[#allocation12 + $0x170] sm:$0xff]  ;;  %v2144_v48 = vld [vmem:[#allocation12 + $0x178] sm:$0xff] }
  0x75   :  { %v2146_v49 = vld [vmem:[#allocation12 + $0x180] sm:$0xff]  ;;  %v2148_v50 = vld [vmem:[#allocation12 + $0x188] sm:$0xff]  ;;  %v2150_v51 = vld [vmem:[#allocation12 + $0x190] sm:$0xff] }
  0x76   :  { %v2152_v52 = vld [vmem:[#allocation12 + $0x198] sm:$0xff]  ;;  %v2154_v53 = vld [vmem:[#allocation12 + $0x1a0] sm:$0xff]  ;;  %v2156_v54 = vld [vmem:[#allocation12 + $0x1a8] sm:$0xff] }
  0x77   :  { %v2158_v55 = vld [vmem:[#allocation12 + $0x1b0] sm:$0xff]  ;;  %v2160_v56 = vld [vmem:[#allocation12 + $0x1b8] sm:$0xff]  ;;  %v2162_v57 = vld [vmem:[#allocation12 + $0x1c0] sm:$0xff] }
  0x78   :  { %v2164_v58 = vld [vmem:[#allocation12 + $0x1c8] sm:$0xff]  ;;  %v2166_v59 = vld [vmem:[#allocation12 + $0x1d0] sm:$0xff]  ;;  %v2168_v60 = vld [vmem:[#allocation12 + $0x1d8] sm:$0xff] }
  0x79   :  { %v2170_v61 = vld [vmem:[#allocation12 + $0x1e0] sm:$0xff]  ;;  %v2172_v62 = vld [vmem:[#allocation12 + $0x1e8] sm:$0xff]  ;;  %v2174_v63 = vld [vmem:[#allocation12 + $0x1f0] sm:$0xff] }
  0x7a   :  { %v2176_v0 = vld [vmem:[#allocation12 + $0x1f8] sm:$0xff]  ;;  %v149_v3 = vld [vmem:[#allocation10 + $0x8] sm:$0xff]  ;;  %v148_v1 = vld [vmem:[#allocation10] sm:$0xff] }
  0x7b   :  { %2662 = vst [vmem:[#allocation50_spill] sm:$0xff] %v2176_v0  ;;  %v151_v4 = vld [vmem:[#allocation10 + $0x18] sm:$0xff]  ;;  %301 = vmatprep.subr.mxu0 %v149_v3  ;;  %v150_v7 = vld [vmem:[#allocation10 + $0x10] sm:$0xff]  ;;  %v217_v2 = vld [vmem:[#allocation7] sm:$0xff] }
  0x7c   :  { %414 = vmatprep.subr.mxu1 %v151_v4  ;;  %302 = vmatpush1.msra.mxu0 %v148_v1  ;;  %v218_v5 = vld [vmem:[#allocation7 + $0x8] sm:$0xff]  ;;  %v219_v3 = vld [vmem:[#allocation7 + $0x10] sm:$0xff]  ;;  %v220_v1 = vld [vmem:[#allocation7 + $0x18] sm:$0xff] }
  0x7d   :  { %415 = vmatpush1.msra.mxu1 %v150_v7  ;;  %1526 = vmatmul.mubr.msk.f32.vlgmr.msra.gmra.mxu0 %vm246_vm0, %v217_v2  ;;  %v222_v4 = vld [vmem:[#allocation7 + $0x28] sm:$0xff]  ;;  %v224_v7 = vld [vmem:[#allocation7 + $0x38] sm:$0xff] }
  0x7e   :  { %1534 = vmatmul.mubr.msk.f32.vlgmr.msra.gmra.mxu1 %vm246_vm0, %v217_v2  ;;  %341 = vmatprep.mubr.f32.mxu0 %v2663_v8  ;;  %v221_v2 = vld [vmem:[#allocation7 + $0x20] sm:$0xff] }
  0x7f   :  { %454 = vmatprep.mubr.f32.mxu1 %v2663_v8 }
  0x81   :  { %1527 = vmatmul.mubr.msk.f32.gmra.mxu0 %vm246_vm0, %v218_v5 }
  0x82   :  { %1535 = vmatmul.mubr.msk.f32.gmra.mxu1 %vm246_vm0, %v218_v5  ;;  %347 = vmatprep.mubr.f32.mxu0 %v2663_v8  ;;  %v223_v5 = vld [vmem:[#allocation7 + $0x30] sm:$0xff] }
  0x83   :  { %460 = vmatprep.mubr.f32.mxu1 %v2663_v8 }
  0x85   :  { %1528 = vmatmul.mubr.msk.f32.gmra.mxu0 %vm246_vm0, %v219_v3 }
  0x86   :  { %1536 = vmatmul.mubr.msk.f32.gmra.mxu1 %vm246_vm0, %v219_v3  ;;  %353 = vmatprep.mubr.f32.mxu0 %v2663_v8  ;;  %v226_v3 = vlaneseq }
  0x87   :  { %466 = vmatprep.mubr.f32.mxu1 %v2663_v8 }
  0x89   :  { %1529 = vmatmul.mubr.msk.f32.gmra.mxu0 %vm246_vm0, %v220_v1 }
  0x8a   :  { %1537 = vmatmul.mubr.msk.f32.gmra.mxu1 %vm246_vm0, %v220_v1  ;;  %359 = vmatprep.mubr.f32.mxu0 %v2663_v8  ;;  %v2208_v1 = vshrl.u32 %v226_v3, 7 }
  0x8b   :  { %472 = vmatprep.mubr.f32.mxu1 %v2663_v8 }
  0x8c   :  { %2664 = vst [vmem:[#allocation51_spill] sm:$0xff] %v2208_v1  ;;  %v2640_v11 = vsub.s32 1, %v2208_v1 }
  0x8d   :  { %1530 = vmatmul.mubr.msk.f32.gmra.mxu0 %vm246_vm0, %v221_v2 }
  0x8e   :  { %1538 = vmatmul.mubr.msk.f32.gmra.mxu1 %vm246_vm0, %v221_v2  ;;  %365 = vmatprep.mubr.f32.mxu0 %v2663_v8  ;;  %v2638_v2 = vsub.s32 0, %v2208_v1 }
  0x8f   :  { %478 = vmatprep.mubr.f32.mxu1 %v2663_v8 }
  0x91   :  { %1531 = vmatmul.mubr.msk.f32.gmra.mxu0 %vm246_vm0, %v222_v4 }
  0x92   :  { %1539 = vmatmul.mubr.msk.f32.gmra.mxu1 %vm246_vm0, %v222_v4  ;;  %371 = vmatprep.mubr.f32.mxu0 %v2663_v8  ;;  %v2639_v4 = vsub.s32 2, %v2208_v1 }
  0x93   :  { %484 = vmatprep.mubr.f32.mxu1 %v2663_v8 }
  0x95   :  { %1532 = vmatmul.mubr.msk.f32.gmra.mxu0 %vm246_vm0, %v223_v5 }
  0x96   :  { %1540 = vmatmul.mubr.msk.f32.gmra.mxu1 %vm246_vm0, %v223_v5  ;;  %377 = vmatprep.mubr.f32.mxu0 %v2663_v8  ;;  %v216_v5 = vld [vmem:[%s2628_s5] sm:$0xf]  ;;  %s2265_s5 = smov 0  }
  0x97   :  { %490 = vmatprep.mubr.f32.mxu1 %v2663_v8  ;;  %v2641_v8 = vsub.s32 3, %v2208_v1  ;;  %v2219_v6 = vrot.slane %v216_v5, %v2638_v2  ;;  %v2227_v3 = vrot.slane %v216_v5, %v2640_v11 }
  0x99   :  { %1533 = vmatmul.mubr.msk.f32.gmra.mxu0 %vm246_vm0, %v224_v7  ;;  %v2231_v12 = vrot.slane %v216_v5, %v2641_v8 }
  0x9a   :  { %1541 = vmatmul.mubr.msk.f32.gmra.mxu1 %vm246_vm0, %v224_v7  ;;  %v2223_v7 = vrot.slane %v216_v5, %v2639_v4 }
 0x13d   :  { %v337_v9 = vpop.f32.mrf.mxu0 }
 0x13e   :  { %v450_v15 = vpop.f32.mrf.mxu1  ;;  %v338_v10 = vadd.f32 %v337_v9, %v2219_v6 }
 0x13f   :  { %v451_v16 = vadd.f32 %v450_v15, %v2223_v7  ;;  %v339_v2 = vpop.f32.mrf.mxu0 }
 0x140   :  { %v452_v13 = vpop.f32.mrf.mxu1  ;;  %497 = vst [vmem:[#allocation5] sm:$0xff] %v338_v10  ;;  %v340_v4 = vadd.f32 %v339_v2, %v2227_v3 }
 0x141   :  { %499 = vst [vmem:[#allocation5 + $0x10] sm:$0xff] %v451_v16  ;;  %v453_v19 = vadd.f32 %v452_v13, %v2231_v12  ;;  %v343_v11 = vpop.f32.mrf.mxu0 }
 0x142   :  { %v456_v14 = vpop.f32.mrf.mxu1  ;;  %498 = vst [vmem:[#allocation5 + $0x8] sm:$0xff] %v340_v4  ;;  %v344_v5 = vadd.f32 %v343_v11, %v2219_v6 }
 0x143   :  { %500 = vst [vmem:[#allocation5 + $0x18] sm:$0xff] %v453_v19  ;;  %v457_v8 = vadd.f32 %v456_v14, %v2223_v7  ;;  %v345_v1 = vpop.f32.mrf.mxu0 }
 0x144   :  { %v458_v9 = vpop.f32.mrf.mxu1  ;;  %501 = vst [vmem:[#allocation5 + $0x20] sm:$0xff] %v344_v5  ;;  %v346_v15 = vadd.f32 %v345_v1, %v2227_v3 }
 0x145   :  { %503 = vst [vmem:[#allocation5 + $0x30] sm:$0xff] %v457_v8  ;;  %v459_v10 = vadd.f32 %v458_v9, %v2231_v12  ;;  %v349_v16 = vpop.f32.mrf.mxu0 }
 0x146   :  { %v462_v2 = vpop.f32.mrf.mxu1  ;;  %502 = vst [vmem:[#allocation5 + $0x28] sm:$0xff] %v346_v15  ;;  %v350_v13 = vadd.f32 %v349_v16, %v2219_v6 }
 0x147   :  { %504 = vst [vmem:[#allocation5 + $0x38] sm:$0xff] %v459_v10  ;;  %v463_v19 = vadd.f32 %v462_v2, %v2223_v7  ;;  %v351_v4 = vpop.f32.mrf.mxu0 }
 0x148   :  { %v464_v11 = vpop.f32.mrf.mxu1  ;;  %505 = vst [vmem:[#allocation5 + $0x40] sm:$0xff] %v350_v13  ;;  %v352_v14 = vadd.f32 %v351_v4, %v2227_v3 }
 0x149   :  { %507 = vst [vmem:[#allocation5 + $0x50] sm:$0xff] %v463_v19  ;;  %v465_v8 = vadd.f32 %v464_v11, %v2231_v12  ;;  %v355_v5 = vpop.f32.mrf.mxu0 }
 0x14a   :  { %v468_v1 = vpop.f32.mrf.mxu1  ;;  %506 = vst [vmem:[#allocation5 + $0x48] sm:$0xff] %v352_v14  ;;  %v356_v9 = vadd.f32 %v355_v5, %v2219_v6 }
 0x14b   :  { %508 = vst [vmem:[#allocation5 + $0x58] sm:$0xff] %v465_v8  ;;  %v469_v15 = vadd.f32 %v468_v1, %v2223_v7  ;;  %v357_v10 = vpop.f32.mrf.mxu0 }
 0x14c   :  { %v470_v16 = vpop.f32.mrf.mxu1  ;;  %509 = vst [vmem:[#allocation5 + $0x60] sm:$0xff] %v356_v9  ;;  %v358_v2 = vadd.f32 %v357_v10, %v2227_v3 }
 0x14d   :  { %511 = vst [vmem:[#allocation5 + $0x70] sm:$0xff] %v469_v15  ;;  %v471_v13 = vadd.f32 %v470_v16, %v2231_v12  ;;  %v361_v19 = vpop.f32.mrf.mxu0 }
 0x14e   :  { %v474_v4 = vpop.f32.mrf.mxu1  ;;  %510 = vst [vmem:[#allocation5 + $0x68] sm:$0xff] %v358_v2  ;;  %v362_v11 = vadd.f32 %v361_v19, %v2219_v6 }
 0x14f   :  { %512 = vst [vmem:[#allocation5 + $0x78] sm:$0xff] %v471_v13  ;;  %v475_v14 = vadd.f32 %v474_v4, %v2223_v7  ;;  %v363_v8 = vpop.f32.mrf.mxu0 }
 0x150   :  { %v476_v5 = vpop.f32.mrf.mxu1  ;;  %513 = vst [vmem:[#allocation5 + $0x80] sm:$0xff] %v362_v11  ;;  %v364_v1 = vadd.f32 %v363_v8, %v2227_v3 }
 0x151   :  { %515 = vst [vmem:[#allocation5 + $0x90] sm:$0xff] %v475_v14  ;;  %v477_v9 = vadd.f32 %v476_v5, %v2231_v12  ;;  %v367_v15 = vpop.f32.mrf.mxu0 }
 0x152   :  { %v480_v10 = vpop.f32.mrf.mxu1  ;;  %514 = vst [vmem:[#allocation5 + $0x88] sm:$0xff] %v364_v1  ;;  %v368_v16 = vadd.f32 %v367_v15, %v2219_v6 }
 0x153   :  { %516 = vst [vmem:[#allocation5 + $0x98] sm:$0xff] %v477_v9  ;;  %v481_v2 = vadd.f32 %v480_v10, %v2223_v7  ;;  %v369_v13 = vpop.f32.mrf.mxu0 }
 0x154   :  { %v482_v19 = vpop.f32.mrf.mxu1  ;;  %517 = vst [vmem:[#allocation5 + $0xa0] sm:$0xff] %v368_v16  ;;  %v370_v4 = vadd.f32 %v369_v13, %v2227_v3 }
 0x155   :  { %519 = vst [vmem:[#allocation5 + $0xb0] sm:$0xff] %v481_v2  ;;  %v483_v11 = vadd.f32 %v482_v19, %v2231_v12  ;;  %v373_v14 = vpop.f32.mrf.mxu0 }
 0x156   :  { %v486_v8 = vpop.f32.mrf.mxu1  ;;  %518 = vst [vmem:[#allocation5 + $0xa8] sm:$0xff] %v370_v4  ;;  %v374_v5 = vadd.f32 %v373_v14, %v2219_v6 }
 0x157   :  { %520 = vst [vmem:[#allocation5 + $0xb8] sm:$0xff] %v483_v11  ;;  %v487_v1 = vadd.f32 %v486_v8, %v2223_v7  ;;  %v375_v9 = vpop.f32.mrf.mxu0 }
 0x158   :  { %v488_v15 = vpop.f32.mrf.mxu1  ;;  %521 = vst [vmem:[#allocation5 + $0xc0] sm:$0xff] %v374_v5  ;;  %v376_v10 = vadd.f32 %v375_v9, %v2227_v3 }
 0x159   :  { %523 = vst [vmem:[#allocation5 + $0xd0] sm:$0xff] %v487_v1  ;;  %v489_v16 = vadd.f32 %v488_v15, %v2231_v12  ;;  %v379_v2 = vpop.f32.mrf.mxu0 }
 0x15a   :  { %v492_v13 = vpop.f32.mrf.mxu1  ;;  %522 = vst [vmem:[#allocation5 + $0xc8] sm:$0xff] %v376_v10  ;;  %v380_v19 = vadd.f32 %v379_v2, %v2219_v6 }
 0x15b   :  { %524 = vst [vmem:[#allocation5 + $0xd8] sm:$0xff] %v489_v16  ;;  %v493_v4 = vadd.f32 %v492_v13, %v2223_v7  ;;  %v381_v11 = vpop.f32.mrf.mxu0 }
 0x15c   :  { %v494_v14 = vpop.f32.mrf.mxu1  ;;  %525 = vst [vmem:[#allocation5 + $0xe0] sm:$0xff] %v380_v19  ;;  %v382_v8 = vadd.f32 %v381_v11, %v2227_v3 }
 0x15d   :  { %527 = vst [vmem:[#allocation5 + $0xf0] sm:$0xff] %v493_v4  ;;  %v495_v5 = vadd.f32 %v494_v14, %v2231_v12 }
 0x15e   :  { %526 = vst [vmem:[#allocation5 + $0xe8] sm:$0xff] %v382_v8 }
 0x15f   :  { %528 = vst [vmem:[#allocation5 + $0xf8] sm:$0xff] %v495_v5 }
 0x160 LB: > { %547 = vmatprep.subr.mxu0 %v2172_v62  ;;  %v2665_v0 = vld [vmem:[#allocation50_spill] sm:$0xff]  ;;  %v1946_v6 = vmov 0.0   ;;  %v2666_v17 = vld [vmem:[#allocation48_spill] sm:$0xff]  ;;  %v2667_v12 = vld [vmem:[#allocation45_spill] sm:$0xff]  ;;  %s1542_s6 = sshll.u32 %s1927_s5, 3  ;;  %s534_s5 = sadd.s32 1, %s1927_s5   ;;  %s1927_s5 = sphi %s2265_s5, %s534_s5  }
 0x161   : > { %618 = vmatprep.subr.mxu1 %v2665_v0  ;;  %548 = vmatpush1.msra.mxu0 %v2170_v61  ;;  %v2668_v7 = vld [vmem:[#allocation49_spill] sm:$0xff]  ;;  %v2669_v3 = vld [vmem:[#allocation44_spill] sm:$0xff]  ;;  %v2670_v1 = vld [vmem:[#allocation47_spill] sm:$0xff]  ;;  %s538_s18 = sshra.s32 %s1542_s6, 3  ;;  %s719_s21 = scalar_lea.vmem [#allocation4], %s1542_s6 }
 0x162   : > { %619 = vmatpush1.msra.mxu1 %v2174_v63  ;;  %549 = vmatprep.subr.mxu0 %v2164_v58  ;;  %v2671_v9 = vld [vmem:[#allocation41_spill] sm:$0xff]  ;;  %v2672_v15 = vld [vmem:[#allocation46_spill] sm:$0xff]  ;;  %v2673_v10 = vld [vmem:[#allocation40_spill] sm:$0xff]  ;;  %s1557_s19 = sshll.u32 %s538_s18, 5  ;;  %p531_p12 = scmp.ge.s32.totalorder %s534_s5, 8  }
 0x163   : > { %620 = vmatprep.subr.mxu1 %v2168_v60  ;;  %550 = vmatpush1.msra.mxu0 %v2162_v57  ;;  %v2674_v16 = vld [vmem:[#allocation43_spill] sm:$0xff]  ;;  %v2675_v2 = vld [vmem:[#allocation37_spill] sm:$0xff]  ;;  %v2676_v13 = vld [vmem:[#allocation42_spill] sm:$0xff]  ;;  %s542_s20 = scalar_lea.vmem [#allocation5], %s1557_s19 }
 0x164   : > { %621 = vmatpush1.msra.mxu1 %v2166_v59  ;;  %551 = vmatprep.subr.mxu0 %v2156_v54  ;;  %v2677_v19 = vld [vmem:[#allocation36_spill] sm:$0xff]  ;;  %v2678_v11 = vld [vmem:[#allocation39_spill] sm:$0xff]  ;;  %v2679_v14 = vld [vmem:[#allocation33_spill] sm:$0xff] }
 0x165   : > { %622 = vmatprep.subr.mxu1 %v2160_v56  ;;  %552 = vmatpush1.msra.mxu0 %v2154_v53  ;;  %v536_v4 = vld [vmem:[#allocation2] sm:$0xff]  ;;  %v2680_v8 = vld [vmem:[#allocation38_spill] sm:$0xff]  ;;  %v2426_v53 = vld [vmem:[#allocation15 + $0x148] sm:$0xff] (%p531_p12) }
 0x166   : > { %623 = vmatpush1.msra.mxu1 %v2158_v55  ;;  %553 = vmatprep.subr.mxu0 %v2148_v50  ;;  %v2681_v5 = vld [vmem:[#allocation32_spill] sm:$0xff]  ;;  %v2420_v50 = vld [vmem:[#allocation15 + $0x130] sm:$0xff] (%p531_p12)  ;;  %v2430_v55 = vld [vmem:[#allocation15 + $0x158] sm:$0xff] (%p531_p12) }
 0x167   : > { %624 = vmatprep.subr.mxu1 %v2152_v52  ;;  %554 = vmatpush1.msra.mxu0 %v2146_v49  ;;  %v2418_v49 = vld [vmem:[#allocation15 + $0x128] sm:$0xff] (%p531_p12)  ;;  %v2424_v52 = vld [vmem:[#allocation15 + $0x140] sm:$0xff] (%p531_p12)  ;;  %v2428_v54 = vld [vmem:[#allocation15 + $0x150] sm:$0xff] (%p531_p12) }
 0x168   : > { %625 = vmatpush1.msra.mxu1 %v2150_v51  ;;  %555 = vmatprep.subr.mxu0 %v2140_v46  ;;  %v2412_v46 = vld [vmem:[#allocation15 + $0x110] sm:$0xff] (%p531_p12)  ;;  %v2422_v51 = vld [vmem:[#allocation15 + $0x138] sm:$0xff] (%p531_p12)  ;;  %v2432_v56 = vld [vmem:[#allocation15 + $0x160] sm:$0xff] (%p531_p12) }
 0x169   : > { %626 = vmatprep.subr.mxu1 %v2144_v48  ;;  %556 = vmatpush1.msra.mxu0 %v2138_v45  ;;  %v2410_v45 = vld [vmem:[#allocation15 + $0x108] sm:$0xff] (%p531_p12)  ;;  %v2416_v48 = vld [vmem:[#allocation15 + $0x120] sm:$0xff] (%p531_p12)  ;;  %v2436_v58 = vld [vmem:[#allocation15 + $0x170] sm:$0xff] (%p531_p12) }
 0x16a   : > { %627 = vmatpush1.msra.mxu1 %v2142_v47  ;;  %557 = vmatprep.subr.mxu0 %v2132_v42  ;;  %v2404_v42 = vld [vmem:[#allocation15 + $0xf0] sm:$0xff] (%p531_p12)  ;;  %v2414_v47 = vld [vmem:[#allocation15 + $0x118] sm:$0xff] (%p531_p12)  ;;  %v2434_v57 = vld [vmem:[#allocation15 + $0x168] sm:$0xff] (%p531_p12) }
 0x16b   : > { %628 = vmatprep.subr.mxu1 %v2136_v44  ;;  %558 = vmatpush1.msra.mxu0 %v2130_v41  ;;  %v2402_v41 = vld [vmem:[#allocation15 + $0xe8] sm:$0xff] (%p531_p12)  ;;  %v2408_v44 = vld [vmem:[#allocation15 + $0x100] sm:$0xff] (%p531_p12)  ;;  %v2438_v59 = vld [vmem:[#allocation15 + $0x178] sm:$0xff] (%p531_p12) }
 0x16c   : > { %629 = vmatpush1.msra.mxu1 %v2134_v43  ;;  %559 = vmatprep.subr.mxu0 %v2124_v38  ;;  %v2396_v38 = vld [vmem:[#allocation15 + $0xd0] sm:$0xff] (%p531_p12)  ;;  %v2406_v43 = vld [vmem:[#allocation15 + $0xf8] sm:$0xff] (%p531_p12)  ;;  %v2440_v60 = vld [vmem:[#allocation15 + $0x180] sm:$0xff] (%p531_p12) }
 0x16d   : > { %630 = vmatprep.subr.mxu1 %v2128_v40  ;;  %560 = vmatpush1.msra.mxu0 %v2122_v37  ;;  %v2394_v37 = vld [vmem:[#allocation15 + $0xc8] sm:$0xff] (%p531_p12)  ;;  %v2400_v40 = vld [vmem:[#allocation15 + $0xe0] sm:$0xff] (%p531_p12)  ;;  %v2444_v62 = vld [vmem:[#allocation15 + $0x190] sm:$0xff] (%p531_p12) }
 0x16e   : > { %631 = vmatpush1.msra.mxu1 %v2126_v39  ;;  %561 = vmatprep.subr.mxu0 %v2116_v34  ;;  %v2388_v34 = vld [vmem:[#allocation15 + $0xb0] sm:$0xff] (%p531_p12)  ;;  %v2398_v39 = vld [vmem:[#allocation15 + $0xd8] sm:$0xff] (%p531_p12)  ;;  %v2442_v61 = vld [vmem:[#allocation15 + $0x188] sm:$0xff] (%p531_p12) }
 0x16f   : > { %632 = vmatprep.subr.mxu1 %v2120_v36  ;;  %562 = vmatpush1.msra.mxu0 %v2114_v33  ;;  %v2386_v33 = vld [vmem:[#allocation15 + $0xa8] sm:$0xff] (%p531_p12)  ;;  %v2392_v36 = vld [vmem:[#allocation15 + $0xc0] sm:$0xff] (%p531_p12)  ;;  %v2446_v63 = vld [vmem:[#allocation15 + $0x198] sm:$0xff] (%p531_p12) }
 0x170   : > { %611 = vmatprep.mubr.f32.mxu0 %v1946_v6  ;;  %563 = vmatprep.subr.mxu0 %v2108_v30  ;;  %v2380_v30 = vld [vmem:[#allocation15 + $0x90] sm:$0xff] (%p531_p12) }
 0x171   : > { %633 = vmatpush1.msra.mxu1 %v2118_v35  ;;  %564 = vmatpush1.msra.mxu0 %v2106_v29  ;;  %v2378_v29 = vld [vmem:[#allocation15 + $0x88] sm:$0xff] (%p531_p12)  ;;  %2701 = vst [vmem:[#allocation48_spill] sm:$0xff] (%p531_p12), %v2380_v30  ;;  %v2390_v35 = vld [vmem:[#allocation15 + $0xb8] sm:$0xff] (%p531_p12) }
 0x172   : > { %634 = vmatprep.subr.mxu1 %v2112_v32  ;;  %565 = vmatprep.subr.mxu0 %v2100_v26  ;;  %v2372_v26 = vld [vmem:[#allocation15 + $0x70] sm:$0xff] (%p531_p12)  ;;  %v2384_v32 = vld [vmem:[#allocation15 + $0xa0] sm:$0xff] (%p531_p12)  ;;  %v762_v30 = vld [vmem:[#allocation13 + $0x148] sm:$0xff] (%p531_p12) }
 0x173   : > { %635 = vmatpush1.msra.mxu1 %v2110_v31  ;;  %566 = vmatpush1.msra.mxu0 %v2098_v25  ;;  %v2370_v25 = vld [vmem:[#allocation15 + $0x68] sm:$0xff] (%p531_p12)  ;;  %2699 = vst [vmem:[#allocation46_spill] sm:$0xff] (%p531_p12), %v2372_v26  ;;  %v2382_v31 = vld [vmem:[#allocation15 + $0x98] sm:$0xff] (%p531_p12)  ;;  %v775_v26 = vld [vmem:[#allocation13 + $0x1b0] sm:$0xff] (%p531_p12) }
 0x174   : > { %636 = vmatprep.subr.mxu1 %v2104_v28  ;;  %567 = vmatprep.subr.mxu0 %v2092_v22  ;;  %v2364_v22 = vld [vmem:[#allocation15 + $0x50] sm:$0xff] (%p531_p12)  ;;  %2698 = vst [vmem:[#allocation45_spill] sm:$0xff] (%p531_p12), %v2370_v25  ;;  %v2376_v28 = vld [vmem:[#allocation15 + $0x80] sm:$0xff] (%p531_p12) }
 0x175   : > { %637 = vmatpush1.msra.mxu1 %v2102_v27  ;;  %568 = vmatpush1.msra.mxu0 %v2090_v21  ;;  %v2362_v21 = vld [vmem:[#allocation15 + $0x48] sm:$0xff] (%p531_p12)  ;;  %2695 = vst [vmem:[#allocation42_spill] sm:$0xff] (%p531_p12), %v2364_v22  ;;  %v2374_v27 = vld [vmem:[#allocation15 + $0x78] sm:$0xff] (%p531_p12)  ;;  %v779_v22 = vld [vmem:[#allocation13 + $0x1d0] sm:$0xff] (%p531_p12) }
 0x176   : > { %638 = vmatprep.subr.mxu1 %v2096_v24  ;;  %569 = vmatprep.subr.mxu0 %v2084_v18  ;;  %v2358_v18 = vld [vmem:[#allocation15 + $0x38] sm:$0xff] (%p531_p12)  ;;  %2694 = vst [vmem:[#allocation41_spill] sm:$0xff] (%p531_p12), %v2362_v21  ;;  %v2368_v24 = vld [vmem:[#allocation15 + $0x60] sm:$0xff] (%p531_p12)  ;;  %2700 = vst [vmem:[#allocation47_spill] sm:$0xff] (%p531_p12), %v2374_v27 }
 0x177   : > { %639 = vmatpush1.msra.mxu1 %v2094_v23  ;;  %570 = vmatpush1.msra.mxu0 %v2666_v17  ;;  %2692 = vst [vmem:[#allocation39_spill] sm:$0xff] (%p531_p12), %v2358_v18  ;;  %v2366_v23 = vld [vmem:[#allocation15 + $0x58] sm:$0xff] (%p531_p12)  ;;  %2697 = vst [vmem:[#allocation44_spill] sm:$0xff] (%p531_p12), %v2368_v24  ;;  %v770_v21 = vld [vmem:[#allocation13 + $0x188] sm:$0xff] (%p531_p12) }
 0x178   : > { %640 = vmatprep.subr.mxu1 %v2088_v20  ;;  %571 = vmatprep.subr.mxu0 %v2667_v12  ;;  %v2682_v12 = vld [vmem:[#allocation35_spill] sm:$0xff]  ;;  %v2360_v20 = vld [vmem:[#allocation15 + $0x40] sm:$0xff] (%p531_p12)  ;;  %2696 = vst [vmem:[#allocation43_spill] sm:$0xff] (%p531_p12), %v2366_v23  ;;  %v771_v24 = vld [vmem:[#allocation13 + $0x190] sm:$0xff] (%p531_p12) }
 0x179   : > { %641 = vmatpush1.msra.mxu1 %v2668_v7  ;;  %572 = vmatpush1.msra.mxu0 %v2669_v3  ;;  %v2683_v7 = vld [vmem:[#allocation34_spill] sm:$0xff]  ;;  %v543_v3 = vld [vmem:[%s542_s20] sm:$0xff]  ;;  %2693 = vst [vmem:[#allocation40_spill] sm:$0xff] (%p531_p12), %v2360_v20  ;;  %v780_v18 = vld [vmem:[#allocation13 + $0x1d8] sm:$0xff] (%p531_p12) }
 0x17a   : > { %642 = vmatprep.subr.mxu1 %v2670_v1  ;;  %573 = vmatprep.subr.mxu0 %v2671_v9  ;;  %v544_v9 = vld [vmem:[%s542_s20 + $0x8] sm:$0xff]  ;;  %v776_v23 = vld [vmem:[#allocation13 + $0x1b8] sm:$0xff] (%p531_p12)  ;;  %v773_v20 = vld [vmem:[#allocation13 + $0x1a0] sm:$0xff] (%p531_p12) }
 0x17b   : > { %643 = vmatpush1.msra.mxu1 %v2672_v15  ;;  %574 = vmatpush1.msra.mxu0 %v2673_v10  ;;  %v772_v27 = vld [vmem:[#allocation13 + $0x198] sm:$0xff] (%p531_p12)  ;;  %v763_v25 = vld [vmem:[#allocation13 + $0x150] sm:$0xff] (%p531_p12) }
 0x17c   : > { %644 = vmatprep.subr.mxu1 %v2674_v16  ;;  %575 = vmatprep.subr.mxu0 %v2675_v2 }
 0x17d   : > { %645 = vmatpush1.msra.mxu1 %v2676_v13  ;;  %576 = vmatpush1.msra.mxu0 %v2677_v19 }
 0x17e   : > { %646 = vmatprep.subr.mxu1 %v2678_v11  ;;  %577 = vmatprep.subr.mxu0 %v2679_v14  ;;  %v546_v11 = vld [vmem:[%s542_s20 + $0x18] sm:$0xff] }
 0x17f   : > { %647 = vmatpush1.msra.mxu1 %v2680_v8  ;;  %578 = vmatpush1.msra.mxu0 %v2681_v5 }
 0x180   : > { %648 = vmatprep.subr.mxu1 %v2682_v12  ;;  %612 = vmatmul.mubr.f32.vlgmr.msra.gmra.mxu0 %v536_v4 }
 0x181   : > { %649 = vmatpush1.msra.mxu1 %v2683_v7  ;;  %682 = vmatprep.mubr.f32.mxu1 %v1946_v6  ;;  %v545_v6 = vld [vmem:[%s542_s20 + $0x10] sm:$0xff] }
 0x182   : > { %683 = vmatmul.mubr.f32.vlgmr.msra.gmra.mxu1 %v536_v4 }
 0x240   : > { %v613_v1 = vpop.f32.mrf.mxu0 }
 0x241   : > { %v689_v15 = vadd.f32 %v613_v1, %v543_v3 }
 0x242   : > { %v615_v10 = vpop.f32.mrf.mxu0  ;;  %v684_v19 = vpop.f32.mrf.mxu1 }
 0x243   : > { %v1545_v16 = vmul.f32 -1.442695, %v689_v15  ;;  %v690_v2 = vadd.f32 %v615_v10, %v544_v9  ;;  %v691_v8 = vadd.f32 %v684_v19, %v545_v6  ;;  %v537_v10 = vld [vmem:[#allocation3] sm:$0xff] }
 0x244   : > { %v686_v14 = vpop.f32.mrf.mxu1 }
 0x245   : > { %1691 = vpow2.f32 %v1545_v16  ;;  %v1546_v13 = vmul.f32 -1.442695, %v690_v2  ;;  %v692_v4 = vadd.f32 %v686_v14, %v546_v11 }
 0x247   : > { %1693 = vpow2.f32 %v1546_v13  ;;  %v1547_v5 = vmul.f32 -1.442695, %v692_v4  ;;  %v2342_v4 = vld [vmem:[#allocation15] sm:$0xff] (%p531_p12) }
 0x248   : > { %1695 = vtanh.f32 %v691_v8  ;;  %2684 = vst [vmem:[#allocation32_spill] sm:$0xff] (%p531_p12), %v2342_v4  ;;  %v2686_v8 = vmov (%p531_p12), 0.0   ;;  %v781_v4 = vld [vmem:[#allocation13 + $0x1e0] sm:$0xff] (%p531_p12) }
 0x249   : > { %1697 = vpow2.f32 %v1547_v5  ;;  %943 = vmatprep.mubr.f32.mxu0 (%p531_p12), %v2686_v8  ;;  %1056 = vmatprep.mubr.f32.mxu1 (%p531_p12), %v2686_v8  ;;  %v2348_v5 = vld [vmem:[#allocation15 + $0x10] sm:$0xff] (%p531_p12) }
 0x24a   :  { %2687 = vst [vmem:[#allocation34_spill] sm:$0xff] (%p531_p12), %v2348_v5  ;;  %v2470_v5 = vld [vmem:[#allocation15 + $0x1f8] sm:$0xff] (%p531_p12) }
 0x252   : > { %v1692_v12 = vpop.eup %1691 }
 0x253   : > { %v696_v7 = vadd.f32 1.0, %v1692_v12  ;;  %v2350_v12 = vld [vmem:[#allocation15 + $0x18] sm:$0xff] (%p531_p12) }
 0x254   : > { %v1694_v0 = vpop.eup %1693  ;;  %2688 = vst [vmem:[#allocation35_spill] sm:$0xff] (%p531_p12), %v2350_v12  ;;  %v784_v12 = vld [vmem:[#allocation13 + $0x1f8] sm:$0xff] (%p531_p12) }
 0x255   : > { %1699 = vrcp.f32 %v696_v7  ;;  %v702_v3 = vadd.f32 1.0, %v1694_v0  ;;  %v1696_v1 = vpop.eup %1695  ;;  %v782_v0 = vld [vmem:[#allocation13 + $0x1e8] sm:$0xff] (%p531_p12)  ;;  %v2352_v7 = vld [vmem:[#allocation15 + $0x20] sm:$0xff] (%p531_p12)  ;;  %992 = vmatprep.subr.mxu1 (%p531_p12), %v784_v12 }
 0x256   : > { %v1698_v9 = vpop.eup %1697  ;;  %2689 = vst [vmem:[#allocation36_spill] sm:$0xff] (%p531_p12), %v2352_v7  ;;  %879 = vmatprep.subr.mxu0 (%p531_p12), %v782_v0  ;;  %v2468_v0 = vld [vmem:[#allocation15 + $0x1f0] sm:$0xff] (%p531_p12)  ;;  %v777_v7 = vld [vmem:[#allocation13 + $0x1c0] sm:$0xff] (%p531_p12) }
 0x257   : > { %1701 = vrcp.f32 %v702_v3  ;;  %v709_v2 = vadd.f32 1.0, %v1698_v9  ;;  %v2354_v3 = vld [vmem:[#allocation15 + $0x28] sm:$0xff] (%p531_p12)  ;;  %v2448_v9 = vld [vmem:[#allocation15 + $0x1a0] sm:$0xff] (%p531_p12)  ;;  %2703 = vst [vmem:[#allocation50_spill] sm:$0xff] (%p531_p12), %v2468_v0  ;;  %880 = vmatpush1.msra.mxu0 (%p531_p12), %v781_v4 }
 0x258   :  { %2690 = vst [vmem:[#allocation37_spill] sm:$0xff] (%p531_p12), %v2354_v3  ;;  %v774_v3 = vld [vmem:[#allocation13 + $0x1a8] sm:$0xff] (%p531_p12)  ;;  %v769_v12 = vld [vmem:[#allocation13 + $0x180] sm:$0xff] (%p531_p12) }
 0x259   : > { %1703 = vrcp.f32 %v709_v2  ;;  %v2456_v2 = vld [vmem:[#allocation15 + $0x1c0] sm:$0xff] (%p531_p12)  ;;  %v766_v4 = vld [vmem:[#allocation13 + $0x168] sm:$0xff] (%p531_p12) }
 0x25a   :  { %2702 = vst [vmem:[#allocation49_spill] sm:$0xff] (%p531_p12), %v2456_v2 }
 0x262   : > { %v1700_v15 = vpop.eup %1699 }
 0x263   : > { %v713_v17 = vmul.f32 %v1700_v15, %v1696_v1  ;;  %v2356_v1 = vld [vmem:[#allocation15 + $0x30] sm:$0xff] (%p531_p12)  ;;  %v2450_v15 = vld [vmem:[#allocation15 + $0x1a8] sm:$0xff] (%p531_p12) }
 0x264   : > { %v1702_v16 = vpop.eup %1701  ;;  %2691 = vst [vmem:[#allocation38_spill] sm:$0xff] (%p531_p12), %v2356_v1  ;;  %v783_v1 = vld [vmem:[#allocation13 + $0x1f0] sm:$0xff] (%p531_p12) }
 0x265   : > { %v712_v13 = vmul.f32 %v1702_v16, %v537_v10  ;;  %v2452_v10 = vld [vmem:[#allocation15 + $0x1b0] sm:$0xff] (%p531_p12)  ;;  %v2454_v16 = vld [vmem:[#allocation15 + $0x1b8] sm:$0xff] (%p531_p12)  ;;  %993 = vmatpush1.msra.mxu1 (%p531_p12), %v783_v1 }
 0x266   : > { %v1704_v19 = vpop.eup %1703  ;;  %994 = vmatprep.subr.mxu1 (%p531_p12), %v780_v18  ;;  %v768_v1 = vld [vmem:[#allocation13 + $0x178] sm:$0xff] (%p531_p12)  ;;  %v767_v18 = vld [vmem:[#allocation13 + $0x170] sm:$0xff] (%p531_p12) }
 0x267   : > { %v714_v11 = vadd.f32 %v713_v17, %v712_v13  ;;  %v2344_v17 = vld [vmem:[#allocation15 + $0x8] sm:$0xff] (%p531_p12)  ;;  %995 = vmatpush1.msra.mxu1 (%p531_p12), %v779_v22  ;;  %v761_v22 = vld [vmem:[#allocation13 + $0x140] sm:$0xff] (%p531_p12) }
 0x268   :  { %2685 = vst [vmem:[#allocation33_spill] sm:$0xff] (%p531_p12), %v2344_v17  ;;  %v2458_v13 = vld [vmem:[#allocation15 + $0x1c8] sm:$0xff] (%p531_p12)  ;;  %996 = vmatprep.subr.mxu1 (%p531_p12), %v776_v23  ;;  %v760_v23 = vld [vmem:[#allocation13 + $0x138] sm:$0xff] (%p531_p12) }
 0x269   : > { %1705 = vtanh.f32 %v714_v11  ;;  %718 = vst [vmem:[#allocation3] sm:$0xff] %v714_v11  ;;  %v2460_v11 = vld [vmem:[#allocation15 + $0x1d0] sm:$0xff] (%p531_p12)  ;;  %v778_v17 = vld [vmem:[#allocation13 + $0x1c8] sm:$0xff] (%p531_p12)  ;;  %997 = vmatpush1.msra.mxu1 (%p531_p12), %v775_v26 }
 0x26a   :  { %881 = vmatprep.subr.mxu0 (%p531_p12), %v778_v17  ;;  %998 = vmatprep.subr.mxu1 (%p531_p12), %v772_v27  ;;  %v765_v17 = vld [vmem:[#allocation13 + $0x160] sm:$0xff] (%p531_p12)  ;;  %v759_v26 = vld [vmem:[#allocation13 + $0x130] sm:$0xff] (%p531_p12)  ;;  %v756_v27 = vld [vmem:[#allocation13 + $0x118] sm:$0xff] (%p531_p12) }
 0x26b   :  { %882 = vmatpush1.msra.mxu0 (%p531_p12), %v777_v7  ;;  %999 = vmatpush1.msra.mxu1 (%p531_p12), %v771_v24  ;;  %v764_v7 = vld [vmem:[#allocation13 + $0x158] sm:$0xff] (%p531_p12)  ;;  %v753_v24 = vld [vmem:[#allocation13 + $0x100] sm:$0xff] (%p531_p12) }
 0x26c   :  { %883 = vmatprep.subr.mxu0 (%p531_p12), %v774_v3  ;;  %1000 = vmatprep.subr.mxu1 (%p531_p12), %v768_v1  ;;  %v758_v3 = vld [vmem:[#allocation13 + $0x128] sm:$0xff] (%p531_p12)  ;;  %v752_v1 = vld [vmem:[#allocation13 + $0xf8] sm:$0xff] (%p531_p12) }
 0x26d   :  { %884 = vmatpush1.msra.mxu0 (%p531_p12), %v773_v20  ;;  %1001 = vmatpush1.msra.mxu1 (%p531_p12), %v767_v18  ;;  %v757_v20 = vld [vmem:[#allocation13 + $0x120] sm:$0xff] (%p531_p12)  ;;  %v751_v18 = vld [vmem:[#allocation13 + $0xf0] sm:$0xff] (%p531_p12) }
 0x26e   :  { %885 = vmatprep.subr.mxu0 (%p531_p12), %v770_v21  ;;  %1002 = vmatprep.subr.mxu1 (%p531_p12), %v764_v7  ;;  %v754_v21 = vld [vmem:[#allocation13 + $0x108] sm:$0xff] (%p531_p12)  ;;  %v748_v7 = vld [vmem:[#allocation13 + $0xd8] sm:$0xff] (%p531_p12) }
 0x26f   :  { %886 = vmatpush1.msra.mxu0 (%p531_p12), %v769_v12  ;;  %1003 = vmatpush1.msra.mxu1 (%p531_p12), %v763_v25  ;;  %v755_v12 = vld [vmem:[#allocation13 + $0x110] sm:$0xff] (%p531_p12)  ;;  %v745_v25 = vld [vmem:[#allocation13 + $0xc0] sm:$0xff] (%p531_p12) }
 0x270   :  { %887 = vmatprep.subr.mxu0 (%p531_p12), %v766_v4  ;;  %1004 = vmatprep.subr.mxu1 (%p531_p12), %v760_v23  ;;  %v750_v4 = vld [vmem:[#allocation13 + $0xe8] sm:$0xff] (%p531_p12)  ;;  %v744_v23 = vld [vmem:[#allocation13 + $0xb8] sm:$0xff] (%p531_p12) }
 0x271   :  { %888 = vmatpush1.msra.mxu0 (%p531_p12), %v765_v17  ;;  %1005 = vmatpush1.msra.mxu1 (%p531_p12), %v759_v26  ;;  %v749_v17 = vld [vmem:[#allocation13 + $0xe0] sm:$0xff] (%p531_p12)  ;;  %v743_v26 = vld [vmem:[#allocation13 + $0xb0] sm:$0xff] (%p531_p12) }
 0x272   :  { %889 = vmatprep.subr.mxu0 (%p531_p12), %v762_v30  ;;  %1006 = vmatprep.subr.mxu1 (%p531_p12), %v756_v27  ;;  %v746_v30 = vld [vmem:[#allocation13 + $0xc8] sm:$0xff] (%p531_p12)  ;;  %v740_v27 = vld [vmem:[#allocation13 + $0x98] sm:$0xff] (%p531_p12) }
 0x273   :  { %890 = vmatpush1.msra.mxu0 (%p531_p12), %v761_v22  ;;  %1007 = vmatpush1.msra.mxu1 (%p531_p12), %v755_v12  ;;  %v747_v22 = vld [vmem:[#allocation13 + $0xd0] sm:$0xff] (%p531_p12) }
 0x274   :  { %891 = vmatprep.subr.mxu0 (%p531_p12), %v758_v3  ;;  %1008 = vmatprep.subr.mxu1 (%p531_p12), %v752_v1  ;;  %v742_v3 = vld [vmem:[#allocation13 + $0xa8] sm:$0xff] (%p531_p12)  ;;  %v739_v12 = vld [vmem:[#allocation13 + $0x90] sm:$0xff] (%p531_p12)  ;;  %v736_v1 = vld [vmem:[#allocation13 + $0x78] sm:$0xff] (%p531_p12) }
 0x275   :  { %533 = sbr.rel (!%p531_p12) target bundleno = 352 (0x160), region = 114  ;;  %892 = vmatpush1.msra.mxu0 (%p531_p12), %v757_v20  ;;  %1009 = vmatpush1.msra.mxu1 (%p531_p12), %v751_v18  ;;  %v741_v20 = vld [vmem:[#allocation13 + $0xa0] sm:$0xff] (%p531_p12)  ;;  %v735_v18 = vld [vmem:[#allocation13 + $0x70] sm:$0xff] (%p531_p12) }
 0x276   : > { %v1706_v14 = vpop.eup %1705  ;;  %893 = vmatprep.subr.mxu0 (%p531_p12), %v754_v21  ;;  %1010 = vmatprep.subr.mxu1 (%p531_p12), %v748_v7  ;;  %v738_v21 = vld [vmem:[#allocation13 + $0x88] sm:$0xff] (%p531_p12)  ;;  %v732_v7 = vld [vmem:[#allocation13 + $0x58] sm:$0xff] (%p531_p12) }
 0x277   : > { %v716_v6 = vmul.f32 %v1706_v14, %v1704_v19  ;;  %v2462_v19 = vld [vmem:[#allocation15 + $0x1d8] sm:$0xff] (%p531_p12)  ;;  %v2464_v14 = vld [vmem:[#allocation15 + $0x1e0] sm:$0xff] (%p531_p12)  ;;  %894 = vmatpush1.msra.mxu0 (%p531_p12), %v753_v24  ;;  %1011 = vmatpush1.msra.mxu1 (%p531_p12), %v747_v22  ;;  %v731_v22 = vld [vmem:[#allocation13 + $0x50] sm:$0xff] (%p531_p12) }
 0x278   :  { %895 = vmatprep.subr.mxu0 (%p531_p12), %v750_v4  ;;  %1012 = vmatprep.subr.mxu1 (%p531_p12), %v744_v23  ;;  %v737_v24 = vld [vmem:[#allocation13 + $0x80] sm:$0xff] (%p531_p12)  ;;  %v734_v4 = vld [vmem:[#allocation13 + $0x68] sm:$0xff] (%p531_p12)  ;;  %v728_v23 = vld [vmem:[#allocation13 + $0x38] sm:$0xff] (%p531_p12) }
 0x279   : > { %717 = vst [vmem:[#allocation2] sm:$0xff] %v716_v6  ;;  %720 = vst [vmem:[%s719_s21] sm:$0xff] %v716_v6  ;;  %v2466_v6 = vld [vmem:[#allocation15 + $0x1e8] sm:$0xff] (%p531_p12)  ;;  %896 = vmatpush1.msra.mxu0 (%p531_p12), %v749_v17  ;;  %1013 = vmatpush1.msra.mxu1 (%p531_p12), %v743_v26  ;;  %v733_v17 = vld [vmem:[#allocation13 + $0x60] sm:$0xff] (%p531_p12) }
 0x27a   :  { %897 = vmatprep.subr.mxu0 %v746_v30  ;;  %1014 = vmatprep.subr.mxu1 %v740_v27  ;;  %v730_v30 = vld [vmem:[#allocation13 + $0x48] sm:$0xff]  ;;  %v727_v26 = vld [vmem:[#allocation13 + $0x30] sm:$0xff]  ;;  %v724_v27 = vld [vmem:[#allocation13 + $0x18] sm:$0xff] }
 0x27b   :  { %898 = vmatpush1.msra.mxu0 %v745_v25  ;;  %1015 = vmatpush1.msra.mxu1 %v739_v12  ;;  %v729_v25 = vld [vmem:[#allocation13 + $0x40] sm:$0xff]  ;;  %v723_v12 = vld [vmem:[#allocation13 + $0x10] sm:$0xff] }
 0x27c   :  { %899 = vmatprep.subr.mxu0 %v742_v3  ;;  %1016 = vmatprep.subr.mxu1 %v736_v1  ;;  %v726_v3 = vld [vmem:[#allocation13 + $0x28] sm:$0xff] }
 0x27d   :  { %900 = vmatpush1.msra.mxu0 %v741_v20  ;;  %1017 = vmatpush1.msra.mxu1 %v735_v18  ;;  %v725_v20 = vld [vmem:[#allocation13 + $0x20] sm:$0xff] }
 0x27e   :  { %901 = vmatprep.subr.mxu0 %v738_v21  ;;  %1018 = vmatprep.subr.mxu1 %v732_v7  ;;  %v722_v21 = vld [vmem:[#allocation13 + $0x8] sm:$0xff] }
 0x27f   :  { %902 = vmatpush1.msra.mxu0 %v737_v24  ;;  %1019 = vmatpush1.msra.mxu1 %v731_v22  ;;  %v721_v24 = vld [vmem:[#allocation13] sm:$0xff] }
 0x280   :  { %903 = vmatprep.subr.mxu0 %v734_v4  ;;  %1020 = vmatprep.subr.mxu1 %v728_v23  ;;  %v850_v4 = vld [vmem:[#allocation4] sm:$0xff]  ;;  %v851_v1 = vld [vmem:[#allocation4 + $0x8] sm:$0xff]  ;;  %v853_v18 = vld [vmem:[#allocation4 + $0x18] sm:$0xff] }
 0x281   :  { %904 = vmatpush1.msra.mxu0 %v733_v17  ;;  %1021 = vmatpush1.msra.mxu1 %v727_v26  ;;  %v852_v17 = vld [vmem:[#allocation4 + $0x10] sm:$0xff]  ;;  %v855_v7 = vld [vmem:[#allocation4 + $0x28] sm:$0xff]  ;;  %v857_v22 = vld [vmem:[#allocation4 + $0x38] sm:$0xff] }
 0x282   :  { %905 = vmatprep.subr.mxu0 %v730_v30  ;;  %1022 = vmatprep.subr.mxu1 %v724_v27  ;;  %v854_v30 = vld [vmem:[#allocation4 + $0x20] sm:$0xff]  ;;  %v2704_v23 = vld [vmem:[#allocation51_spill] sm:$0xff] }
 0x283   :  { %906 = vmatpush1.msra.mxu0 %v729_v25  ;;  %1023 = vmatpush1.msra.mxu1 %v723_v12  ;;  %v856_v25 = vld [vmem:[#allocation4 + $0x30] sm:$0xff] }
 0x284   :  { %907 = vmatprep.subr.mxu0 %v726_v3  ;;  %1057 = vmatmul.mubr.f32.vlgmr.msra.gmra.mxu1 %v850_v4  ;;  %v849_v3 = vld [vmem:[%s2631_s8] sm:$0xf]  ;;  %s2537_s8 = smov 0  }
 0x285   :  { %908 = vmatpush1.msra.mxu0 %v725_v20  ;;  %1062 = vmatprep.mubr.f32.mxu1 %v2686_v8  ;;  %v2705_v20 = vsub.s32 0, %v2704_v23 }
 0x286   :  { %909 = vmatprep.subr.mxu0 %v722_v21  ;;  %v2706_v21 = vsub.s32 2, %v2704_v23 }
 0x287   :  { %910 = vmatpush1.msra.mxu0 %v721_v24  ;;  %v2491_v26 = vrot.slane %v849_v3, %v2705_v20  ;;  %v2707_v24 = vsub.s32 1, %v2704_v23 }
 0x288   :  { %944 = vmatmul.mubr.f32.vlgmr.msra.gmra.mxu0 %v850_v4  ;;  %1063 = vmatmul.mubr.f32.gmra.mxu1 %v851_v1  ;;  %v2495_v27 = vrot.slane %v849_v3, %v2706_v21 }
 0x289   :  { %949 = vmatprep.mubr.f32.mxu0 %v2686_v8  ;;  %1068 = vmatprep.mubr.f32.mxu1 %v2686_v8  ;;  %v2499_v12 = vrot.slane %v849_v3, %v2707_v24 }
 0x28c   :  { %950 = vmatmul.mubr.f32.gmra.mxu0 %v851_v1  ;;  %1069 = vmatmul.mubr.f32.gmra.mxu1 %v852_v17 }
 0x28d   :  { %955 = vmatprep.mubr.f32.mxu0 %v2686_v8  ;;  %1074 = vmatprep.mubr.f32.mxu1 %v2686_v8 }
 0x290   :  { %956 = vmatmul.mubr.f32.gmra.mxu0 %v852_v17  ;;  %1075 = vmatmul.mubr.f32.gmra.mxu1 %v853_v18 }
 0x291   :  { %961 = vmatprep.mubr.f32.mxu0 %v2686_v8  ;;  %1080 = vmatprep.mubr.f32.mxu1 %v2686_v8 }
 0x294   :  { %962 = vmatmul.mubr.f32.gmra.mxu0 %v853_v18  ;;  %1081 = vmatmul.mubr.f32.gmra.mxu1 %v854_v30 }
 0x295   :  { %967 = vmatprep.mubr.f32.mxu0 %v2686_v8  ;;  %1086 = vmatprep.mubr.f32.mxu1 %v2686_v8 }
 0x298   :  { %968 = vmatmul.mubr.f32.gmra.mxu0 %v854_v30  ;;  %1087 = vmatmul.mubr.f32.gmra.mxu1 %v855_v7 }
 0x299   :  { %973 = vmatprep.mubr.f32.mxu0 %v2686_v8  ;;  %1092 = vmatprep.mubr.f32.mxu1 %v2686_v8 }
 0x29c   :  { %974 = vmatmul.mubr.f32.gmra.mxu0 %v855_v7  ;;  %1093 = vmatmul.mubr.f32.gmra.mxu1 %v856_v25 }
 0x29d   :  { %979 = vmatprep.mubr.f32.mxu0 %v2686_v8  ;;  %1098 = vmatprep.mubr.f32.mxu1 %v2686_v8 }
 0x2a0   :  { %980 = vmatmul.mubr.f32.gmra.mxu0 %v856_v25  ;;  %1099 = vmatmul.mubr.f32.gmra.mxu1 %v857_v22 }
 0x2a1   :  { %985 = vmatprep.mubr.f32.mxu0 %v2686_v8  ;;  %v2708_v8 = vsub.s32 3, %v2704_v23 }
 0x2a3   :  { %v2503_v4 = vrot.slane %v849_v3, %v2708_v8 }
 0x2a4   :  { %986 = vmatmul.mubr.f32.gmra.mxu0 %v857_v22 }
 0x344   :  { %v1058_v17 = vpop.f32.mrf.mxu1 }
 0x345   :  { %v1059_v30 = vadd.f32 %v1058_v17, %v2495_v27 }
 0x346   :  { %v1060_v25 = vpop.f32.mrf.mxu1 }
 0x347   :  { %1107 = vst [vmem:[#allocation5 + $0x10] sm:$0xff] %v1059_v30  ;;  %v1061_v20 = vadd.f32 %v1060_v25, %v2503_v4 }
 0x348   :  { %v945_v1 = vpop.f32.mrf.mxu0  ;;  %v1064_v24 = vpop.f32.mrf.mxu1 }
 0x349   :  { %v946_v18 = vadd.f32 %v945_v1, %v2491_v26  ;;  %1108 = vst [vmem:[#allocation5 + $0x18] sm:$0xff] %v1061_v20  ;;  %v1065_v23 = vadd.f32 %v1064_v24, %v2495_v27 }
 0x34a   :  { %v947_v7 = vpop.f32.mrf.mxu0  ;;  %v1066_v1 = vpop.f32.mrf.mxu1 }
 0x34b   :  { %1105 = vst [vmem:[#allocation5] sm:$0xff] %v946_v18  ;;  %v948_v22 = vadd.f32 %v947_v7, %v2499_v12  ;;  %1111 = vst [vmem:[#allocation5 + $0x30] sm:$0xff] %v1065_v23  ;;  %v1067_v18 = vadd.f32 %v1066_v1, %v2503_v4 }
 0x34c   :  { %v951_v21 = vpop.f32.mrf.mxu0  ;;  %v1070_v7 = vpop.f32.mrf.mxu1 }
 0x34d   :  { %1106 = vst [vmem:[#allocation5 + $0x8] sm:$0xff] %v948_v22  ;;  %v952_v3 = vadd.f32 %v951_v21, %v2491_v26  ;;  %1112 = vst [vmem:[#allocation5 + $0x38] sm:$0xff] %v1067_v18  ;;  %v1071_v22 = vadd.f32 %v1070_v7, %v2495_v27 }
 0x34e   :  { %v953_v8 = vpop.f32.mrf.mxu0  ;;  %v1072_v21 = vpop.f32.mrf.mxu1 }
 0x34f   :  { %1109 = vst [vmem:[#allocation5 + $0x20] sm:$0xff] %v952_v3  ;;  %v954_v17 = vadd.f32 %v953_v8, %v2499_v12  ;;  %1115 = vst [vmem:[#allocation5 + $0x50] sm:$0xff] %v1071_v22  ;;  %v1073_v3 = vadd.f32 %v1072_v21, %v2503_v4 }
 0x350   :  { %v957_v30 = vpop.f32.mrf.mxu0  ;;  %v1076_v8 = vpop.f32.mrf.mxu1 }
 0x351   :  { %1110 = vst [vmem:[#allocation5 + $0x28] sm:$0xff] %v954_v17  ;;  %v958_v25 = vadd.f32 %v957_v30, %v2491_v26  ;;  %1116 = vst [vmem:[#allocation5 + $0x58] sm:$0xff] %v1073_v3  ;;  %v1077_v17 = vadd.f32 %v1076_v8, %v2495_v27 }
 0x352   :  { %v959_v20 = vpop.f32.mrf.mxu0  ;;  %v1078_v30 = vpop.f32.mrf.mxu1 }
 0x353   :  { %1113 = vst [vmem:[#allocation5 + $0x40] sm:$0xff] %v958_v25  ;;  %v960_v24 = vadd.f32 %v959_v20, %v2499_v12  ;;  %1119 = vst [vmem:[#allocation5 + $0x70] sm:$0xff] %v1077_v17  ;;  %v1079_v25 = vadd.f32 %v1078_v30, %v2503_v4 }
 0x354   :  { %v963_v23 = vpop.f32.mrf.mxu0  ;;  %v1082_v20 = vpop.f32.mrf.mxu1 }
 0x355   :  { %1114 = vst [vmem:[#allocation5 + $0x48] sm:$0xff] %v960_v24  ;;  %v964_v1 = vadd.f32 %v963_v23, %v2491_v26  ;;  %1120 = vst [vmem:[#allocation5 + $0x78] sm:$0xff] %v1079_v25  ;;  %v1083_v24 = vadd.f32 %v1082_v20, %v2495_v27 }
 0x356   :  { %v965_v18 = vpop.f32.mrf.mxu0  ;;  %v1084_v23 = vpop.f32.mrf.mxu1 }
 0x357   :  { %1117 = vst [vmem:[#allocation5 + $0x60] sm:$0xff] %v964_v1  ;;  %v966_v7 = vadd.f32 %v965_v18, %v2499_v12  ;;  %1123 = vst [vmem:[#allocation5 + $0x90] sm:$0xff] %v1083_v24  ;;  %v1085_v1 = vadd.f32 %v1084_v23, %v2503_v4 }
 0x358   :  { %v969_v22 = vpop.f32.mrf.mxu0  ;;  %v1088_v18 = vpop.f32.mrf.mxu1 }
 0x359   :  { %1118 = vst [vmem:[#allocation5 + $0x68] sm:$0xff] %v966_v7  ;;  %v970_v21 = vadd.f32 %v969_v22, %v2491_v26  ;;  %1124 = vst [vmem:[#allocation5 + $0x98] sm:$0xff] %v1085_v1  ;;  %v1089_v7 = vadd.f32 %v1088_v18, %v2495_v27 }
 0x35a   :  { %v971_v3 = vpop.f32.mrf.mxu0  ;;  %v1090_v22 = vpop.f32.mrf.mxu1 }
 0x35b   :  { %1121 = vst [vmem:[#allocation5 + $0x80] sm:$0xff] %v970_v21  ;;  %v972_v8 = vadd.f32 %v971_v3, %v2499_v12  ;;  %1127 = vst [vmem:[#allocation5 + $0xb0] sm:$0xff] %v1089_v7  ;;  %v1091_v21 = vadd.f32 %v1090_v22, %v2503_v4 }
 0x35c   :  { %v975_v17 = vpop.f32.mrf.mxu0  ;;  %v1094_v3 = vpop.f32.mrf.mxu1 }
 0x35d   :  { %1122 = vst [vmem:[#allocation5 + $0x88] sm:$0xff] %v972_v8  ;;  %v976_v30 = vadd.f32 %v975_v17, %v2491_v26  ;;  %1128 = vst [vmem:[#allocation5 + $0xb8] sm:$0xff] %v1091_v21  ;;  %v1095_v8 = vadd.f32 %v1094_v3, %v2495_v27 }
 0x35e   :  { %v977_v25 = vpop.f32.mrf.mxu0  ;;  %v1096_v17 = vpop.f32.mrf.mxu1 }
 0x35f   :  { %1125 = vst [vmem:[#allocation5 + $0xa0] sm:$0xff] %v976_v30  ;;  %v978_v20 = vadd.f32 %v977_v25, %v2499_v12  ;;  %1131 = vst [vmem:[#allocation5 + $0xd0] sm:$0xff] %v1095_v8  ;;  %v1097_v30 = vadd.f32 %v1096_v17, %v2503_v4 }
 0x360   :  { %v981_v24 = vpop.f32.mrf.mxu0  ;;  %v1100_v25 = vpop.f32.mrf.mxu1 }
 0x361   :  { %1126 = vst [vmem:[#allocation5 + $0xa8] sm:$0xff] %v978_v20  ;;  %v982_v23 = vadd.f32 %v981_v24, %v2491_v26  ;;  %1132 = vst [vmem:[#allocation5 + $0xd8] sm:$0xff] %v1097_v30  ;;  %v1101_v20 = vadd.f32 %v1100_v25, %v2495_v27 }
 0x362   :  { %v983_v1 = vpop.f32.mrf.mxu0  ;;  %v1102_v24 = vpop.f32.mrf.mxu1 }
 0x363   :  { %1129 = vst [vmem:[#allocation5 + $0xc0] sm:$0xff] %v982_v23  ;;  %v984_v18 = vadd.f32 %v983_v1, %v2499_v12  ;;  %1135 = vst [vmem:[#allocation5 + $0xf0] sm:$0xff] %v1101_v20  ;;  %v1103_v23 = vadd.f32 %v1102_v24, %v2503_v4 }
 0x364   :  { %v987_v7 = vpop.f32.mrf.mxu0 }
 0x365   :  { %1130 = vst [vmem:[#allocation5 + $0xc8] sm:$0xff] %v984_v18  ;;  %v988_v22 = vadd.f32 %v987_v7, %v2491_v26  ;;  %1136 = vst [vmem:[#allocation5 + $0xf8] sm:$0xff] %v1103_v23 }
 0x366   :  { %v989_v21 = vpop.f32.mrf.mxu0 }
 0x367   :  { %1133 = vst [vmem:[#allocation5 + $0xe0] sm:$0xff] %v988_v22  ;;  %v990_v3 = vadd.f32 %v989_v21, %v2499_v12 }
 0x369   :  { %1134 = vst [vmem:[#allocation5 + $0xe8] sm:$0xff] %v990_v3 }
 0x36a LB: > { %1157 = vmatprep.subr.mxu0 %v2466_v6  ;;  %1228 = vmatprep.subr.mxu1 %v2470_v5  ;;  %v2709_v0 = vld [vmem:[#allocation50_spill] sm:$0xff]  ;;  %v2710_v2 = vld [vmem:[#allocation49_spill] sm:$0xff]  ;;  %v1947_v26 = vmov 0.0   ;;  %v2712_v12 = vld [vmem:[#allocation48_spill] sm:$0xff]  ;;  %s1548_s23 = sshll.u32 %s1931_s8, 3  ;;  %s1142_s8 = sadd.s32 1, %s1931_s8   ;;  %s1931_s8 = sphi %s2537_s8, %s1142_s8  }
 0x36b   : > { %1158 = vmatpush1.msra.mxu0 %v2464_v14  ;;  %1229 = vmatpush1.msra.mxu1 %v2709_v0  ;;  %v2711_v27 = vld [vmem:[#allocation45_spill] sm:$0xff]  ;;  %v2713_v4 = vld [vmem:[#allocation44_spill] sm:$0xff]  ;;  %v2714_v8 = vld [vmem:[#allocation47_spill] sm:$0xff]  ;;  %s1148_s24 = sshra.s32 %s1548_s23, 3  ;;  %s1329_s4 = scalar_lea.vmem [#allocation4], %s1548_s23 }
 0x36c   : > { %1159 = vmatprep.subr.mxu0 %v2458_v13  ;;  %1230 = vmatprep.subr.mxu1 %v2462_v19  ;;  %v2715_v1 = vld [vmem:[#allocation41_spill] sm:$0xff]  ;;  %v2716_v17 = vld [vmem:[#allocation46_spill] sm:$0xff]  ;;  %v2717_v18 = vld [vmem:[#allocation40_spill] sm:$0xff]  ;;  %s1558_s25 = sshll.u32 %s1148_s24, 5  ;;  %p1139_p13 = scmp.ge.s32.totalorder %s1142_s8, 8  }
 0x36d   : > { %1160 = vmatpush1.msra.mxu0 %v2710_v2  ;;  %1231 = vmatpush1.msra.mxu1 %v2460_v11  ;;  %v2718_v30 = vld [vmem:[#allocation43_spill] sm:$0xff]  ;;  %v2719_v7 = vld [vmem:[#allocation37_spill] sm:$0xff]  ;;  %v2720_v25 = vld [vmem:[#allocation42_spill] sm:$0xff]  ;;  %s1152_s26 = scalar_lea.vmem [#allocation5], %s1558_s25  ;;  %s1948_s27 = smov (%p1139_p13), [#allocation18]  }
 0x36e   : > { %1161 = vmatprep.subr.mxu0 %v2450_v15  ;;  %1232 = vmatprep.subr.mxu1 %v2454_v16  ;;  %v2721_v22 = vld [vmem:[#allocation36_spill] sm:$0xff]  ;;  %v1145_v20 = vld [vmem:[#allocation2 + $0x8] sm:$0xff]  ;;  %v2722_v21 = vld [vmem:[#allocation39_spill] sm:$0xff]  ;;  %s1480_s28 = sshll.u32 (%p1139_p13), %s1948_s27, 4  ;;  %s1481_s28 = int_to_ptr.vmem [resolvable:$true] %s1480_s28 }
 0x36f   : > { %1162 = vmatpush1.msra.mxu0 %v2448_v9  ;;  %1233 = vmatpush1.msra.mxu1 %v2452_v10  ;;  %v2723_v24 = vld [vmem:[#allocation33_spill] sm:$0xff]  ;;  %v2724_v3 = vld [vmem:[#allocation38_spill] sm:$0xff]  ;;  %v2725_v23 = vld [vmem:[#allocation32_spill] sm:$0xff]  ;;  %p1888_p1 = scmp.lt.s32.totalorder (%p1139_p13), %s1481_s28, %s1481_s28 }
 0x370   : > { %1163 = vmatprep.subr.mxu0 %v2442_v61  ;;  %1234 = vmatprep.subr.mxu1 %v2446_v63  ;;  %v1349_v5 = vld [vmem:[#allocation16 + $0x50] sm:$0xff] (%p1139_p13) }
 0x371   : > { %1164 = vmatpush1.msra.mxu0 %v2440_v60  ;;  %1235 = vmatpush1.msra.mxu1 %v2444_v62 }
 0x372   : > { %1165 = vmatprep.subr.mxu0 %v2434_v57  ;;  %1236 = vmatprep.subr.mxu1 %v2438_v59 }
 0x373   : > { %1166 = vmatpush1.msra.mxu0 %v2432_v56  ;;  %1237 = vmatpush1.msra.mxu1 %v2436_v58 }
 0x374   : > { %1167 = vmatprep.subr.mxu0 %v2426_v53  ;;  %1238 = vmatprep.subr.mxu1 %v2430_v55 }
 0x375   : > { %1168 = vmatpush1.msra.mxu0 %v2424_v52  ;;  %1239 = vmatpush1.msra.mxu1 %v2428_v54 }
 0x376   : > { %1169 = vmatprep.subr.mxu0 %v2418_v49  ;;  %1240 = vmatprep.subr.mxu1 %v2422_v51 }
 0x377   : > { %1170 = vmatpush1.msra.mxu0 %v2416_v48  ;;  %1241 = vmatpush1.msra.mxu1 %v2420_v50 }
 0x378   : > { %1171 = vmatprep.subr.mxu0 %v2410_v45  ;;  %1242 = vmatprep.subr.mxu1 %v2414_v47  ;;  %v1554_v47 = vld [vmem:[%s2633_s10] ss:$0 sm:$0xff] (%p1139_p13)  ;;  %s1883_s10 = scalar_lea.vmem (%p1139_p13), %s1481_s28, 1024 }
 0x379   : > { %1172 = vmatpush1.msra.mxu0 %v2408_v44  ;;  %1221 = vmatprep.mubr.f32.mxu0 %v1947_v26  ;;  %p1884_p0 = scmp.ne.s32.totalorder (%p1139_p13), %s1481_s28, %s1883_s10  ;;  %p1889_p2 = scmp.lt.s32.totalorder (%p1139_p13), %s1883_s10, %s1883_s10 }
 0x37a   : > { %1173 = vmatprep.subr.mxu0 %v2402_v41  ;;  %1243 = vmatpush1.msra.mxu1 %v2412_v46 }
 0x37b   : > { %1174 = vmatpush1.msra.mxu0 %v2400_v40  ;;  %1244 = vmatprep.subr.mxu1 %v2406_v43  ;;  %p1890_p3 = por (%p1139_p13), %p1889_p2, %p1888_p1 }
 0x37c   : > { %1175 = vmatprep.subr.mxu0 %v2394_v37  ;;  %1245 = vmatpush1.msra.mxu1 %v2404_v42  ;;  %v1340_v37 = vld [vmem:[#allocation16 + $0x8] sm:$0xff] (%p1139_p13) }
 0x37d   : > { %1176 = vmatpush1.msra.mxu0 %v2392_v36  ;;  %1246 = vmatprep.subr.mxu1 %v2398_v39  ;;  %v1341_v36 = vld [vmem:[#allocation16 + $0x10] sm:$0xff] (%p1139_p13)  ;;  %p1891_p4 = pnand (%p1139_p13), %p1890_p3, %p1884_p0 }
 0x37e   : > { %1177 = vmatprep.subr.mxu0 %v2386_v33  ;;  %1247 = vmatpush1.msra.mxu1 %v2396_v38  ;;  %v1344_v33 = vld [vmem:[#allocation16 + $0x28] sm:$0xff] (%p1139_p13)  ;;  %v1339_v38 = vld [vmem:[#allocation16] sm:$0xff] (%p1139_p13) }
 0x37f   : > { %1178 = vmatpush1.msra.mxu0 %v2384_v32  ;;  %1248 = vmatprep.subr.mxu1 %v2390_v35  ;;  %v1345_v32 = vld [vmem:[#allocation16 + $0x30] sm:$0xff] (%p1139_p13)  ;;  %v1342_v35 = vld [vmem:[#allocation16 + $0x18] sm:$0xff] (%p1139_p13) }
 0x380   : > { %1179 = vmatprep.subr.mxu0 %v2378_v29  ;;  %1249 = vmatpush1.msra.mxu1 %v2388_v34  ;;  %v1347_v29 = vld [vmem:[#allocation16 + $0x40] sm:$0xff] (%p1139_p13) }
 0x381   : > { %1180 = vmatpush1.msra.mxu0 %v2376_v28  ;;  %1250 = vmatprep.subr.mxu1 %v2382_v31  ;;  %v1348_v28 = vld [vmem:[#allocation16 + $0x48] sm:$0xff] (%p1139_p13)  ;;  %v1346_v31 = vld [vmem:[#allocation16 + $0x38] sm:$0xff] (%p1139_p13)  ;;  %v1343_v34 = vld [vmem:[#allocation16 + $0x20] sm:$0xff] (%p1139_p13) }
 0x382   : > { %1181 = vmatprep.subr.mxu0 %v2711_v27  ;;  %1251 = vmatpush1.msra.mxu1 %v2712_v12  ;;  %v2726_v27 = vld [vmem:[#allocation35_spill] sm:$0xff]  ;;  %v2727_v12 = vld [vmem:[#allocation34_spill] sm:$0xff] }
 0x383   : > { %1182 = vmatpush1.msra.mxu0 %v2713_v4  ;;  %1252 = vmatprep.subr.mxu1 %v2714_v8  ;;  %v1153_v4 = vld [vmem:[%s1152_s26] sm:$0xff] }
 0x384   : > { %1183 = vmatprep.subr.mxu0 %v2715_v1  ;;  %1253 = vmatpush1.msra.mxu1 %v2716_v17  ;;  %v1154_v1 = vld [vmem:[%s1152_s26 + $0x8] sm:$0xff] }
 0x385   : > { %1184 = vmatpush1.msra.mxu0 %v2717_v18  ;;  %1254 = vmatprep.subr.mxu1 %v2718_v30 }
 0x386   : > { %1185 = vmatprep.subr.mxu0 %v2719_v7  ;;  %1255 = vmatpush1.msra.mxu1 %v2720_v25 }
 0x387   : > { %1186 = vmatpush1.msra.mxu0 %v2721_v22  ;;  %1256 = vmatprep.subr.mxu1 %v2722_v21  ;;  %v1156_v21 = vld [vmem:[%s1152_s26 + $0x18] sm:$0xff] }
 0x388   : > { %1187 = vmatprep.subr.mxu0 %v2723_v24  ;;  %1257 = vmatpush1.msra.mxu1 %v2724_v3 }
 0x389   : > { %1188 = vmatpush1.msra.mxu0 %v2725_v23  ;;  %1258 = vmatprep.subr.mxu1 %v2726_v27 }
 0x38a   : > { %1222 = vmatmul.mubr.f32.vlgmr.msra.gmra.mxu0 %v1145_v20  ;;  %1259 = vmatpush1.msra.mxu1 %v2727_v12 }
 0x38b   : > { %1292 = vmatprep.mubr.f32.mxu1 %v1947_v26  ;;  %v1155_v26 = vld [vmem:[%s1152_s26 + $0x10] sm:$0xff] }
 0x38c   : > { %1293 = vmatmul.mubr.f32.vlgmr.msra.gmra.mxu1 %v1145_v20 }
 0x44a   : > { %v1223_v8 = vpop.f32.mrf.mxu0 }
 0x44b   : > { %v1299_v17 = vadd.f32 %v1223_v8, %v1153_v4 }
 0x44c   : > { %v1225_v18 = vpop.f32.mrf.mxu0  ;;  %v1294_v22 = vpop.f32.mrf.mxu1 }
 0x44d   : > { %v1551_v30 = vmul.f32 -1.442695, %v1299_v17  ;;  %v1300_v7 = vadd.f32 %v1225_v18, %v1154_v1  ;;  %v1301_v3 = vadd.f32 %v1294_v22, %v1155_v26  ;;  %v1147_v18 = vld [vmem:[#allocation3 + $0x8] sm:$0xff] }
 0x44e   : > { %v1296_v24 = vpop.f32.mrf.mxu1 }
 0x44f   : > { %1707 = vpow2.f32 %v1551_v30  ;;  %v1552_v25 = vmul.f32 -1.442695, %v1300_v7  ;;  %v1302_v20 = vadd.f32 %v1296_v24, %v1156_v21 }
 0x451   : > { %1709 = vpow2.f32 %v1552_v25  ;;  %v1553_v23 = vmul.f32 -1.442695, %v1302_v20  ;;  %v1353_v20 = vld [vmem:[#allocation16 + $0x70] sm:$0xff] (%p1139_p13) }
 0x452   : > { %1711 = vtanh.f32 %v1301_v3  ;;  %v1351_v3 = vld [vmem:[#allocation16 + $0x60] sm:$0xff] (%p1139_p13) }
 0x453   : > { %1713 = vpow2.f32 %v1553_v23  ;;  %v1350_v23 = vld [vmem:[#allocation16 + $0x58] sm:$0xff] (%p1139_p13) }
 0x45c   : > { %v1708_v27 = vpop.eup %1707 }
 0x45d   : > { %v1306_v12 = vadd.f32 1.0, %v1708_v27 }
 0x45e   : > { %v1710_v0 = vpop.eup %1709 }
 0x45f   : > { %1715 = vrcp.f32 %v1306_v12  ;;  %v1312_v4 = vadd.f32 1.0, %v1710_v0  ;;  %v1712_v8 = vpop.eup %1711  ;;  %v1354_v0 = vld [vmem:[#allocation16 + $0x78] sm:$0xff] (%p1139_p13) }
 0x460   : > { %v1714_v1 = vpop.eup %1713  ;;  %1583 = vmatprep.subr.mxu0 (%p1139_p13), %v1354_v0  ;;  %1627 = vmatprep.subr.mxu1 (%p1139_p13), %v1354_v0 }
 0x461   : > { %1717 = vrcp.f32 %v1312_v4  ;;  %v1319_v7 = vadd.f32 1.0, %v1714_v1  ;;  %1584 = vmatpush3.msra.mxu0 (%p1139_p13), %v1354_v0  ;;  %1643 = vmatpush3.msra.mxu1 (%p1139_p13), %v1354_v0 }
 0x462   :  { %1585 = vmatprep.subr.mxu0 (%p1139_p13), %v1353_v20  ;;  %1628 = vmatprep.subr.mxu1 (%p1139_p13), %v1353_v20 }
 0x463   : > { %1719 = vrcp.f32 %v1319_v7  ;;  %1586 = vmatpush3.msra.mxu0 (%p1139_p13), %v1353_v20  ;;  %1644 = vmatpush3.msra.mxu1 (%p1139_p13), %v1353_v20 }
 0x46c   : > { %v1716_v17 = vpop.eup %1715 }
 0x46d   : > { %v1323_v2 = vmul.f32 %v1716_v17, %v1712_v8 }
 0x46e   : > { %v1718_v30 = vpop.eup %1717 }
 0x46f   : > { %v1322_v25 = vmul.f32 %v1718_v30, %v1147_v18 }
 0x470   : > { %v1720_v22 = vpop.eup %1719 }
 0x471   : > { %v1324_v21 = vadd.f32 %v1323_v2, %v1322_v25  ;;  %v1352_v2 = vld [vmem:[#allocation16 + $0x68] sm:$0xff] (%p1139_p13) }
 0x472   :  { %1587 = vmatprep.subr.mxu0 (%p1139_p13), %v1352_v2  ;;  %1629 = vmatprep.subr.mxu1 (%p1139_p13), %v1352_v2 }
 0x473   : > { %1721 = vtanh.f32 %v1324_v21  ;;  %1328 = vst [vmem:[#allocation3 + $0x8] sm:$0xff] %v1324_v21  ;;  %1588 = vmatpush3.msra.mxu0 (%p1139_p13), %v1352_v2  ;;  %1645 = vmatpush3.msra.mxu1 (%p1139_p13), %v1352_v2 }
 0x474   :  { %1589 = vmatprep.subr.mxu0 (%p1139_p13), %v1351_v3  ;;  %1630 = vmatprep.subr.mxu1 (%p1139_p13), %v1351_v3 }
 0x475   :  { %1590 = vmatpush3.msra.mxu0 (%p1139_p13), %v1351_v3  ;;  %1646 = vmatpush3.msra.mxu1 (%p1139_p13), %v1351_v3 }
 0x476   :  { %1591 = vmatprep.subr.mxu0 (%p1139_p13), %v1350_v23  ;;  %1631 = vmatprep.subr.mxu1 (%p1139_p13), %v1350_v23 }
 0x477   :  { %1592 = vmatpush3.msra.mxu0 (%p1139_p13), %v1350_v23  ;;  %1647 = vmatpush3.msra.mxu1 (%p1139_p13), %v1350_v23 }
 0x478   :  { %1593 = vmatprep.subr.mxu0 (%p1139_p13), %v1349_v5  ;;  %1632 = vmatprep.subr.mxu1 (%p1139_p13), %v1349_v5 }
 0x479   :  { %1594 = vmatpush3.msra.mxu0 (%p1139_p13), %v1349_v5  ;;  %1648 = vmatpush3.msra.mxu1 (%p1139_p13), %v1349_v5 }
 0x47a   :  { %1595 = vmatprep.subr.mxu0 (%p1139_p13), %v1348_v28  ;;  %1633 = vmatprep.subr.mxu1 (%p1139_p13), %v1348_v28 }
 0x47b   :  { %1596 = vmatpush3.msra.mxu0 (%p1139_p13), %v1348_v28  ;;  %1649 = vmatpush3.msra.mxu1 (%p1139_p13), %v1348_v28 }
 0x47c   :  { %1597 = vmatprep.subr.mxu0 (%p1139_p13), %v1347_v29  ;;  %1634 = vmatprep.subr.mxu1 (%p1139_p13), %v1347_v29 }
 0x47d   :  { %1598 = vmatpush3.msra.mxu0 (%p1139_p13), %v1347_v29  ;;  %1650 = vmatpush3.msra.mxu1 (%p1139_p13), %v1347_v29 }
 0x47e   :  { %1599 = vmatprep.subr.mxu0 (%p1139_p13), %v1346_v31  ;;  %1635 = vmatprep.subr.mxu1 (%p1139_p13), %v1346_v31 }
 0x47f   :  { %1141 = sbr.rel (!%p1139_p13) target bundleno = 874 (0x36a), region = 125  ;;  %1600 = vmatpush3.msra.mxu0 (%p1139_p13), %v1346_v31  ;;  %1651 = vmatpush3.msra.mxu1 (%p1139_p13), %v1346_v31 }
 0x480   : > { %v1722_v24 = vpop.eup %1721  ;;  %1601 = vmatprep.subr.mxu0 (%p1139_p13), %v1345_v32  ;;  %1636 = vmatprep.subr.mxu1 (%p1139_p13), %v1345_v32 }
 0x481   : > { %v1326_v26 = vmul.f32 %v1722_v24, %v1720_v22  ;;  %1602 = vmatpush3.msra.mxu0 (%p1139_p13), %v1345_v32  ;;  %1652 = vmatpush3.msra.mxu1 (%p1139_p13), %v1345_v32 }
 0x482   :  { %1603 = vmatprep.subr.mxu0 (%p1139_p13), %v1344_v33  ;;  %1637 = vmatprep.subr.mxu1 (%p1139_p13), %v1344_v33 }
 0x483   : > { %1327 = vst [vmem:[#allocation2 + $0x8] sm:$0xff] %v1326_v26  ;;  %1330 = vst [vmem:[%s1329_s4] sm:$0xff] %v1326_v26  ;;  %1604 = vmatpush3.msra.mxu0 (%p1139_p13), %v1344_v33  ;;  %1653 = vmatpush3.msra.mxu1 (%p1139_p13), %v1344_v33 }
 0x484   :  { %1605 = vmatprep.subr.mxu0 %v1343_v34  ;;  %1638 = vmatprep.subr.mxu1 %v1343_v34 }
 0x485   :  { %1606 = vmatpush3.msra.mxu0 %v1343_v34  ;;  %1654 = vmatpush3.msra.mxu1 %v1343_v34 }
 0x486   :  { %1607 = vmatprep.subr.mxu0 %v1342_v35  ;;  %1639 = vmatprep.subr.mxu1 %v1342_v35 }
 0x487   :  { %1608 = vmatpush3.msra.mxu0 %v1342_v35  ;;  %1655 = vmatpush3.msra.mxu1 %v1342_v35 }
 0x488   :  { %1609 = vmatprep.subr.mxu0 %v1341_v36  ;;  %1640 = vmatprep.subr.mxu1 %v1341_v36 }
 0x489   :  { %1610 = vmatpush3.msra.mxu0 %v1341_v36  ;;  %1656 = vmatpush3.msra.mxu1 %v1341_v36 }
 0x48a   :  { %1611 = vmatprep.subr.mxu0 %v1340_v37  ;;  %1641 = vmatprep.subr.mxu1 %v1340_v37  ;;  %v1331_v39 = vld [vmem:[#allocation4] sm:$0xff]  ;;  %v1332_v41 = vld [vmem:[#allocation4 + $0x8] sm:$0xff]  ;;  %v1333_v43 = vld [vmem:[#allocation4 + $0x10] sm:$0xff] }
 0x48b   :  { %1612 = vmatpush3.msra.mxu0 %v1340_v37  ;;  %1657 = vmatpush3.msra.mxu1 %v1340_v37  ;;  %v1335_v40 = vld [vmem:[#allocation4 + $0x20] sm:$0xff]  ;;  %v1336_v42 = vld [vmem:[#allocation4 + $0x28] sm:$0xff]  ;;  %v1337_v44 = vld [vmem:[#allocation4 + $0x30] sm:$0xff] }
 0x48c   :  { %1613 = vmatprep.subr.mxu0 %v1339_v38  ;;  %1642 = vmatprep.subr.mxu1 %v1339_v38  ;;  %v1334_v45 = vld [vmem:[#allocation4 + $0x18] sm:$0xff] }
 0x48d   :  { %1614 = vmatpush3.msra.mxu0 %v1339_v38  ;;  %1658 = vmatpush3.msra.mxu1 %v1339_v38  ;;  %v1338_v46 = vld [vmem:[#allocation4 + $0x38] sm:$0xff] }
 0x48e   :  { %1615 = vmatprep.mubr.f32.mxu0 %v1331_v39  ;;  %1621 = vmatprep.mubr.f32.mxu1 %v1335_v40 }
 0x48f   :  { %1616 = vmatmul.mubr.f32.vlgmr.msra.gmra.mxu0 %v1332_v41  ;;  %1622 = vmatmul.mubr.f32.vlgmr.msra.gmra.mxu1 %v1336_v42 }
 0x490   :  { %1618 = vmatprep.mubr.f32.mxu0 %v1333_v43  ;;  %1624 = vmatprep.mubr.f32.mxu1 %v1337_v44 }
 0x493   :  { %1619 = vmatmul.mubr.f32.gmra.mxu0 %v1334_v45  ;;  %1625 = vmatmul.mubr.f32.gmra.mxu1 %v1338_v46 }
 0x54f   :  { %v1617_v48 = vpop.f32.mrf.mxu0  ;;  %v1623_v49 = vpop.f32.mrf.mxu1 }
 0x550   :  { %v1434_v50 = vadd.f32 %v1617_v48, %v1554_v47  ;;  %v1454_v51 = vadd.f32 %v1623_v49, %v1554_v47 }
 0x551   :  { %v1428_v52 = vpop.f32.mrf.mxu0  ;;  %v1448_v53 = vpop.f32.mrf.mxu1 }
 0x552   :  { %1468 = vst [vmem:[#allocation18 + $0x8] sm:$0xff] %v1434_v50  ;;  %1472 = vst [vmem:[#allocation18 + $0x28] sm:$0xff] %v1454_v51  ;;  %v1429_v54 = vadd.f32 %v1554_v47, %v1428_v52  ;;  %v1449_v55 = vadd.f32 %v1554_v47, %v1448_v53 }
 0x553   :  { %v1620_v56 = vpop.f32.mrf.mxu0  ;;  %v1626_v57 = vpop.f32.mrf.mxu1 }
 0x554   :  { %1467 = vst [vmem:[#allocation18] sm:$0xff] %v1429_v54  ;;  %1471 = vst [vmem:[#allocation18 + $0x20] sm:$0xff] %v1449_v55  ;;  %v1444_v58 = vadd.f32 %v1620_v56, %v1554_v47  ;;  %v1464_v59 = vadd.f32 %v1626_v57, %v1554_v47 }
 0x555   :  { %v1438_v60 = vpop.f32.mrf.mxu0  ;;  %v1458_v61 = vpop.f32.mrf.mxu1 }
 0x556   :  { %1470 = vst [vmem:[#allocation18 + $0x18] sm:$0xff] %v1444_v58  ;;  %1474 = vst [vmem:[#allocation18 + $0x38] sm:$0xff] %v1464_v59  ;;  %v1439_v62 = vadd.f32 %v1554_v47, %v1438_v60  ;;  %v1459_v63 = vadd.f32 %v1554_v47, %v1458_v61 }
 0x558   :  { %1469 = vst [vmem:[#allocation18 + $0x10] sm:$0xff] %v1439_v62  ;;  %1473 = vst [vmem:[#allocation18 + $0x30] sm:$0xff] %v1459_v63 }
 0x559   :  { %1894 = shalt.err (!%p1891_p4)
}
 0x55a   :  { %1486 = dma.vmem_to_hbm [thread:$0]  %s1481_s28, 1024, %s2634_s11, [#allocation9], %s1938_s12, %s1938_s12, %s1939_s13  }
 0x55b   :  { %1923 = dma.done.wait [#allocation9], 1024  }
 0x55c   :  { %1924 = vsyncadd [#allocation9], 4294966272 }
 0x55d   :  { %1490 = vsyncpa [#allocation8], 1 }
 0x55e   :  { %1491 = vsyncpa [#allocation11], 1 }
 0x55f   :  { %1492 = vsyncpa [#allocation14], 1 }
 0x560   :  { %1493 = vsyncpa [#allocation17], 1 }
 0x561   :  { %1494 = vsyncpa [#allocation9], 1 }
 0x562   :  { %1495 = vsyncmov [#allocation6] }
 0x565   :  { %s1496_s9 = vpop.sfrf %1495 }
 0x566   :  { %p1555_p5 = scmp.ne.s32.totalorder %s1496_s9, 0 }
 0x568   :  { %1500 = shalt.err (%p1555_p5)  }
 0x569   :  { %1502 = vsyncmov [#allocation6 + $0x1] }
 0x56c   :  { %s1503_s14 = vpop.sfrf %1502 }
 0x56d   :  { %p1556_p6 = scmp.ne.s32.totalorder %s1503_s14, 0 }
 0x56f   :  { %1507 = shalt.err (%p1556_p6)  }

</bundles_post_ra>
